<compile_context>
chip_gen: v5e
topology: v5e:2x2
jax: 0.10.0
libtpu: 0.0.40
codegen_flags: <defaults>
</compile_context>

<pallas_src>
import functools
import math

import jax
import jax.numpy as jnp
from jax.experimental import pallas as pl
from jax.experimental.pallas import tpu as pltpu

LN_EPS = 1e-5          # PyTorch nn.LayerNorm default
N_PROF = 4             # crowd / interest / category / brand

# f32 inputs (toy shapes are latency bound); f32 accumulation kept regardless.
MXU_INPUT_DTYPE = jnp.float32


def _dot(a, b):
    return jnp.dot(a.astype(MXU_INPUT_DTYPE), b.astype(MXU_INPUT_DTYPE),
                   preferred_element_type=jnp.float32)


def _layernorm(y, eps=LN_EPS):
    # Matches nn.LayerNorm(..., elementwise_affine=False) in the reference.
    mu = jnp.mean(y, axis=-1, keepdims=True)
    var = jnp.mean((y - mu) ** 2, axis=-1, keepdims=True)
    return (y - mu) * jax.lax.rsqrt(var + eps)


def _round_up(x, m):
    return ((x + m - 1) // m) * m


def _pad_rows(x, rows, axis):
    if x.shape[axis] == rows:
        return x
    pad = [(0, 0)] * x.ndim
    pad[axis] = (0, rows - x.shape[axis])
    return jnp.pad(x, pad)


def _tile_cap():
    # v5e/v6e (128 MiB VMEM): allow 256-row tiles to amortize per-step overhead.
    # v7x (64 MiB VMEM, 2 TCs): keep <=128 so >=2 row blocks exist to shard.
    try:
        if pltpu.get_tpu_info().vmem_capacity_bytes >= 96 * 1024 * 1024:
            return 256
    except Exception:
        pass
    return 128


def _row_tiles(n):
    cap = _tile_cap()
    padn = _round_up(max(n, 8), 8)
    # Prefer >=2 row blocks (v7x megacore) but never below the 8-sublane minimum.
    tm = min(cap, max(8, _round_up(-(-padn // 2), 8)))
    padn = _round_up(padn, tm)
    return padn, tm


def _compiler_params(tm):
    return pltpu.CompilerParams(
        dimension_semantics=("parallel",),
        vmem_limit_bytes=(96 if tm >= 256 else 48) * 1024 * 1024,
    )


# ----------------------------------------------------------------------------
# Static packing layouts (weights / biases / output slab)
# ----------------------------------------------------------------------------
def _layouts(cfg):
    d = cfg["nodes_dim"]
    d2 = d // 2
    td = cfg["time_dim"]
    llm = cfg["llm_dim"]
    H = cfg["num_heads"]

    bias_rows = ["w_tproj", "w_time", "b_time", "b_item", "b_agg", "b_umerge",
                 "bq", "bkv", "bo", "b_amerge1", "b_amerge2", "b_imerge",
                 "b_uhist", "b_ihist"] + ["b_prof%d" % s for s in range(N_PROF)]
    bidx = {name: i for i, name in enumerate(bias_rows)}
    bw = max(2 * d, td)

    d_segs = [("w_agg", d), ("w_umerge", 3 * d), ("wq", d), ("wo", d),
              ("w_amerge1", 2 * d), ("w_amerge2", d), ("w_uhist", 2 * d + td),
              ("w_prof", N_PROF * llm), ("e_bcast", _round_up(H, 8)), ("e_sum", d)]
    d2_segs = [("w_item", llm), ("w_imerge", 3 * d2), ("w_ihist", d + d2)]

    def _offsets(segs):
        off, cur = {}, 0
        for name, rows in segs:
            off[name] = cur
            cur += rows
        return off, cur

    doff, drows = _offsets(d_segs)
    d2off, d2rows = _offsets(d2_segs)

    # Output slab: every field starts on a 128-lane boundary (aligned stores);
    # padding columns are trimmed outside the kernel.
    out_fields = [("users_minus", d), ("stat_items", d2), ("items_dyn_minus", d2),
                  ("stat_neg", d2), ("neg_dyn_minus", d2), ("new_users", d),
                  ("new_items_dyn", d2), ("crowds", d), ("interests", d),
                  ("categories", d), ("brands", d)]
    out, cur = {}, 0
    for name, width in out_fields:
        out[name] = (cur, width)
        cur += _round_up(width, 128)

    return dict(bias_rows=bias_rows, bidx=bidx, bw=bw,
                doff=doff, drows=drows, d2off=d2off, d2rows=d2rows,
                out=out, out_cols=cur)


def pack_params(params, cfg):
    """Pack the per-layer weights into the 4 constant slabs the kernel consumes."""
    d = cfg["nodes_dim"]
    llm = cfg["llm_dim"]
    H = cfg["num_heads"]
    lay = _layouts(cfg)
    ap = params["attn"]

    def row(v):
        v = jnp.asarray(v, jnp.float32).reshape(1, -1)
        return jnp.pad(v, ((0, 0), (0, lay["bw"] - v.shape[1])))

    bias_vals = {
        "w_tproj": params["w_tproj"], "w_time": params["w_time"],
        "b_time": params["b_time"], "b_item": params["b_item"],
        "b_agg": params["b_agg"], "b_umerge": params["b_umerge"],
        "bq": ap["bq"], "bkv": jnp.concatenate([ap["bk"], ap["bv"]], axis=1),
        "bo": ap["bo"], "b_amerge1": params["b_amerge1"],
        "b_amerge2": params["b_amerge2"], "b_imerge": params["b_imerge"],
        "b_uhist": params["b_uhist"], "b_ihist": params["b_ihist"],
    }
    for s in range(N_PROF):
        bias_vals["b_prof%d" % s] = params["b_prof"][s]
    bias_pack = jnp.concatenate([row(bias_vals[n]) for n in lay["bias_rows"]], 0)

    # Per-head indicator matrices, hoisted out of the kernel body.
    hd = d // H
    e_bcast = jnp.repeat(jnp.eye(H, dtype=jnp.float32), hd, axis=1)        # (H, d)
    e_bcast_p = jnp.pad(e_bcast, ((0, _round_up(H, 8) - H), (0, 0)))
    e_sum_p = jnp.pad(e_bcast.T, ((0, 0), (0, d - H)))                      # (d, d)

    wd = jnp.concatenate([
        params["w_agg"], params["w_umerge"], ap["wq"], ap["wo"],
        params["w_amerge1"], params["w_amerge2"], params["w_uhist"],
        params["w_prof"].reshape(N_PROF * llm, d), e_bcast_p, e_sum_p], axis=0)
    wd2 = jnp.concatenate([params["w_item"], params["w_imerge"],
                           params["w_ihist"]], axis=0)
    wkv = jnp.concatenate([ap["wk"], ap["wv"]], axis=1)                     # (pk, 2d)
    return {"bias": bias_pack, "wd": wd, "wd2": wd2, "wkv": wkv}


# ----------------------------------------------------------------------------
# Fused per-event kernel (event path + 4 LLM profile projections)
# ----------------------------------------------------------------------------
def _event_kernel(x4_ref, topk_ref, static_ref, feats_ref,
                  bias_ref, wd_ref, wd2_ref, wkv_ref, out_ref, *, dims, lay):
    d = dims["d"]
    d2 = dims["d2"]
    td = dims["td"]
    llm = dims["llm"]
    H = dims["H"]
    pk = dims["pk"]
    tm = x4_ref.shape[1]
    hd = d // H
    scale = 1.0 / math.sqrt(hd)

    bidx, doff, d2off, out = lay["bidx"], lay["doff"], lay["d2off"], lay["out"]

    def b_row(name, w):
        i = bidx[name]
        return bias_ref[i:i + 1, :w]

    def w_d(name, r0, k, cols=None):
        base = doff[name] + r0
        if cols is None:
            return wd_ref[base:base + k, :]
        return wd_ref[base:base + k, :cols]

    def w_d2(name, r0, k):
        base = d2off[name] + r0
        return wd2_ref[base:base + k, :]

    # ---- gathered memory rows: users / items / neg stacked in one block ----
    x3 = x4_ref[0:3, :, :].reshape(3 * tm, d)          # layout-preserving stack
    users = x3[:tm]
    tdiff = x4_ref[3, :, 0:1]                          # (tm, 1), rides in plane 3

    # items_static_layer_norm(item_trans(.)): items & negatives batched (2N rows)
    stat2 = _layernorm(
        _dot(static_ref[...].reshape(2 * tm, llm), w_d2("w_item", 0, llm))
        + b_row("b_item", d2))
    stat_items, stat_neg = stat2[:tm], stat2[tm:]

    # TODO(synk): NodesNeighborsEmbeddingsAggregation needs a host-side graph
    # neighbor finder (data-dependent sampling); approximated by a learned
    # transform of the node memory.  users/items/neg batched along M (3N rows).
    nb3 = jnp.maximum(_dot(x3, w_d("w_agg", 0, d)) + b_row("b_agg", d), 0.0)
    users_nb = nb3[:tm]
    nb2 = nb3[tm:]                                     # items & neg neighbors

    # Jodie time projection: LN(emb * (1 + t * w)) -- pure VPU broadcast
    users_proj = _layernorm(users * (1.0 + tdiff * b_row("w_tproj", d)))

    # users_merge_layer(cat(users, neighbors, projection)) -> concat-free split-K
    users_agg = (_dot(users, w_d("w_umerge", 0, d)) +
                 _dot(users_nb, w_d("w_umerge", d, d)) +
                 _dot(users_proj, w_d("w_umerge", 2 * d, d)) +
                 b_row("b_umerge", d))

    # ---- 4-profile multi-head attention (query = users_agg) ----
    q = _dot(users_agg, w_d("wq", 0, d)) + b_row("bq", d)                # (N, d)
    kv = topk_ref[...].reshape(N_PROF * tm, pk)                          # (4N, pk)
    kvproj = _dot(kv, wkv_ref[...]) + b_row("bkv", 2 * d)                # (4N, 2d)
    kproj = kvproj[:, :d].reshape(N_PROF, tm, d)
    vproj = kvproj[:, d:].reshape(N_PROF, tm, d)
    e_sum = w_d("e_sum", 0, d, H)                                        # (d, H)
    e_bcast = w_d("e_bcast", 0, H)                                       # (H, d)

    qk = (q[None, :, :] * kproj).reshape(N_PROF * tm, d)
    scores = (_dot(qk, e_sum) * scale).reshape(N_PROF, tm, H)            # (4,N,H)
    m = scores[0]
    for s in range(1, N_PROF):
        m = jnp.maximum(m, scores[s])
    ex = jnp.exp(scores - m[None])
    denom = ex[0]
    for s in range(1, N_PROF):
        denom = denom + ex[s]
    inv = pl.reciprocal(denom)                     # exact (EUP slot either way)
    w_h = (ex * inv[None]).reshape(N_PROF * tm, H)
    wb = _dot(w_h, e_bcast).reshape(N_PROF, tm, d)  # per-head weight -> lanes
    ctx = wb[0] * vproj[0]
    for s in range(1, N_PROF):
        ctx = ctx + wb[s] * vproj[s]
    attn_out = _dot(ctx, w_d("wo", 0, d)) + b_row("bo", d)

    # attn_merge_layer = MergeLayer: fc2(relu(fc1(cat(x1, x2)))) -> split-K
    h1 = jnp.maximum(_dot(users_agg, w_d("w_amerge1", 0, d)) +
                     _dot(attn_out, w_d("w_amerge1", d, d)) +
                     b_row("b_amerge1", d), 0.0)
    users_minus = _dot(h1, w_d("w_amerge2", 0, d)) + b_row("b_amerge2", d)

    # items_merge_layer for positive & negative items, batched (2N rows), split-K
    dyn2 = x4_ref[1:3, :, d2:].reshape(2 * tm, d2)     # dynamic halves, no concat
    dyn_minus2 = (_dot(dyn2, w_d2("w_imerge", 0, d2)) +
                  _dot(nb2, w_d2("w_imerge", d2, d)) +
                  b_row("b_imerge", d2))
    items_dyn_minus, neg_dyn_minus = dyn_minus2[:tm], dyn_minus2[tm:]

    # TimeEncode: cos(t * w + b) -- VPU broadcast, no K=1 matmul
    time_enc = jnp.cos(tdiff * b_row("w_time", td) + b_row("b_time", td))

    # TODO(synk): Users/ItemsHistoryUpdater are GRU-style cells in the original;
    # modeled as learned linear updates + fused LayerNorm (split-K; items_minus
    # = [static | dyn_minus] is never materialized via lane-concat).
    new_users = _layernorm(
        _dot(users_minus, w_d("w_uhist", 0, d)) +
        _dot(stat_items, w_d("w_uhist", d, d2)) +
        _dot(items_dyn_minus, w_d("w_uhist", d + d2, d2)) +
        _dot(time_enc, w_d("w_uhist", 2 * d, td)) +
        b_row("b_uhist", d))
    new_items_dyn = _layernorm(
        _dot(dyn2[:tm], w_d2("w_ihist", 0, d2)) +
        _dot(users_minus, w_d2("w_ihist", d2, d)) +
        b_row("b_ihist", d2))

    # ---- fused crowd / interest / category / brand LLM projections ----
    # TODO(synk): dropout on item/profile projections is an eval-mode identity here.
    prof_names = ("crowds", "interests", "categories", "brands")
    prof_out = []
    for s in range(N_PROF):
        prof_out.append(_layernorm(
            _dot(feats_ref[s], w_d("w_prof", s * llm, llm)) +
            b_row("b_prof%d" % s, d)))

    # ---- single output slab, every field starts on a 128-lane boundary ----
    def put(name, val):
        off, width = out[name]
        out_ref[:, off:off + width] = val

    put("users_minus", users_minus)
    put("stat_items", stat_items)
    put("items_dyn_minus", items_dyn_minus)
    put("stat_neg", stat_neg)
    put("neg_dyn_minus", neg_dyn_minus)
    put("new_users", new_users)
    put("new_items_dyn", new_items_dyn)
    for s, name in enumerate(prof_names):
        put(name, prof_out[s])


def event_fused(users_emb, items_emb, neg_emb, t_diff, topk, static_sel, feats,
                packs, cfg, lay):
    n, d = users_emb.shape
    pk = cfg["prune_k"]
    llm = cfg["llm_dim"]
    padn, tm = _row_tiles(n)

    # Stack users / items / neg / broadcast(t_diff) into one (4, N, d) input so
    # the kernel never concatenates and the 1-lane t_diff DMA disappears.
    tdiff_b = jnp.broadcast_to(t_diff.reshape(n, 1), (n, d))
    x4 = jnp.stack([users_emb, items_emb, neg_emb, tdiff_b], axis=0)

    x4 = _pad_rows(x4, padn, 1)
    topk_p = _pad_rows(topk, padn, 1)
    static_p = _pad_rows(static_sel, padn, 1)
    feats_p = _pad_rows(feats, padn, 1)

    kernel = functools.partial(
        _event_kernel,
        dims=dict(d=d, d2=d // 2, td=cfg["time_dim"], llm=llm,
                  H=cfg["num_heads"], pk=pk),
        lay=lay)

    stack_spec = lambda k, cols: pl.BlockSpec((k, tm, cols), lambda i: (0, i, 0))
    const_spec = lambda a: pl.BlockSpec(a.shape, lambda i: (0, 0))

    out_cols = lay["out_cols"]
    slab = pl.pallas_call(
        kernel,
        grid=(padn // tm,),
        in_specs=[stack_spec(4, d), stack_spec(N_PROF, pk),
                  stack_spec(2, llm), stack_spec(N_PROF, llm),
                  const_spec(packs["bias"]), const_spec(packs["wd"]),
                  const_spec(packs["wd2"]), const_spec(packs["wkv"])],
        out_specs=pl.BlockSpec((tm, out_cols), lambda i: (i, 0)),
        out_shape=jax.ShapeDtypeStruct((padn, out_cols), jnp.float32),
        compiler_params=_compiler_params(tm),
    )(x4, topk_p, static_p, feats_p,
      packs["bias"], packs["wd"], packs["wd2"], packs["wkv"])
    return slab[:n]


# ----------------------------------------------------------------------------
# Deterministic parameter / memory initialization (natural, un-packed layout)
# ----------------------------------------------------------------------------
def _xavier(key, shape):
    fan_in, fan_out = shape[-2], shape[-1]
    bound = math.sqrt(6.0 / (fan_in + fan_out))
    return jax.random.uniform(key, shape, jnp.float32, -bound, bound)


def init_params(key, cfg):
    d = cfg["nodes_dim"]
    d2 = d // 2
    td = cfg["time_dim"]
    llm = cfg["llm_dim"]
    pk = cfg["prune_k"]
    keys = jax.random.split(key, 16)
    return {
        "w_item": _xavier(keys[0], (llm, d2)),       "b_item": jnp.zeros((1, d2)),
        # crowd / interest / category / brand LLM projections, stacked on axis 0
        "w_prof": _xavier(keys[1], (N_PROF, llm, d)),
        "b_prof": jnp.zeros((N_PROF, 1, d)),
        # neighbor-aggregation surrogate (see TODO in kernel)
        "w_agg": _xavier(keys[2], (d, d)),           "b_agg": jnp.zeros((1, d)),
        # Jodie time projection
        "w_tproj": _xavier(keys[3], (1, d)),
        # TGAT cosine time encoder basis
        "w_time": (1.0 / (10.0 ** jnp.linspace(0.0, 9.0, td))).reshape(1, td),
        "b_time": jnp.zeros((1, td)),
        # merge layers
        "w_umerge": _xavier(keys[4], (3 * d, d)),    "b_umerge": jnp.zeros((1, d)),
        "w_imerge": _xavier(keys[5], (3 * d2, d2)),  "b_imerge": jnp.zeros((1, d2)),
        "w_amerge1": _xavier(keys[6], (2 * d, d)),   "b_amerge1": jnp.zeros((1, d)),
        "w_amerge2": _xavier(keys[7], (d, d)),       "b_amerge2": jnp.zeros((1, d)),
        # history updaters (linear surrogates)
        "w_uhist": _xavier(keys[8], (2 * d + td, d)), "b_uhist": jnp.zeros((1, d)),
        "w_ihist": _xavier(keys[9], (d2 + d, d2)),    "b_ihist": jnp.zeros((1, d2)),
        # multihead attention (embed_dim=d, kdim=vdim=prune_k)
        "attn": {
            "wq": _xavier(keys[10], (d, d)),  "bq": jnp.zeros((1, d)),
            "wk": _xavier(keys[11], (pk, d)), "bk": jnp.zeros((1, d)),
            "wv": _xavier(keys[12], (pk, d)), "bv": jnp.zeros((1, d)),
            "wo": _xavier(keys[13], (d, d)),  "bo": jnp.zeros((1, d)),
        },
    }


def init_memory(key, cfg):
    d = cfg["nodes_dim"]
    u = cfg["users_num"]
    n_total = cfg["users_num"] + cfg["items_num"]
    keys = jax.random.split(key, 6)
    return {
        "nodes": jax.random.normal(keys[0], (n_total, d), jnp.float32) * 0.1,
        "crowds": jax.random.normal(keys[1], (u, d), jnp.float32) * 0.1,
        "interests": jax.random.normal(keys[2], (u, d), jnp.float32) * 0.1,
        "categories": jax.random.normal(keys[3], (u, d), jnp.float32) * 0.1,
        "brands": jax.random.normal(keys[4], (u, d), jnp.float32) * 0.1,
        "last_update": jnp.zeros((n_total,), jnp.float32),
    }


# ----------------------------------------------------------------------------
# Forward pass (functional: memory side-effects returned as new state)
# ----------------------------------------------------------------------------
def make_forward(cfg):
    d = cfg["nodes_dim"]
    users_num = cfg["users_num"]
    pk = cfg["prune_k"]
    mean_ts = cfg["mean_time_shift_users"]
    std_ts = cfg["std_time_shift_users"]
    lay = _layouts(cfg)

    def forward(packs, memory, users_idxs, items_idxs, neg_idxs,
                items_static_raw, crowds_f, interests_f, categories_f, brands_f,
                timestamps):
        n = users_idxs.shape[0]

        users_emb = memory["nodes"][users_idxs]
        items_emb = memory["nodes"][items_idxs]
        neg_emb = memory["nodes"][neg_idxs]
        crowds_emb = memory["crowds"][users_idxs]
        interests_emb = memory["interests"][users_idxs]
        categories_emb = memory["categories"][users_idxs]
        brands_emb = memory["brands"][users_idxs]

        t_diff = (timestamps - memory["last_update"][users_idxs] - mean_ts) / std_ts

        # Gather-then-project: only this batch's static LLM item rows enter the kernel.
        static_sel = jnp.stack([items_static_raw[items_idxs - users_num],
                                items_static_raw[neg_idxs - users_num]], axis=0)

        # TODO(synk): TopK is data-dependent sorting; done with lax.top_k in JAX.
        topk = jnp.stack([jax.lax.top_k(crowds_emb, pk)[0],
                          jax.lax.top_k(interests_emb, pk)[0],
                          jax.lax.top_k(categories_emb, pk)[0],
                          jax.lax.top_k(brands_emb, pk)[0]], axis=0)

        feats = jnp.stack([crowds_f, interests_f, categories_f, brands_f], axis=0)

        slab = event_fused(users_emb, items_emb, neg_emb, t_diff, topk,
                           static_sel, feats, packs, cfg, lay)

        def get(name):
            off, width = lay["out"][name]
            return slab[:, off:off + width]

        users_minus = get("users_minus")
        stat_items = get("stat_items")
        items_dyn_minus = get("items_dyn_minus")
        stat_neg = get("stat_neg")
        neg_dyn_minus = get("neg_dyn_minus")
        new_users = get("new_users")
        new_items_dyn = get("new_items_dyn")
        crowds_new = get("crowds")
        interests_new = get("interests")
        categories_new = get("categories")
        brands_new = get("brands")

        items_minus = jnp.concatenate([stat_items, items_dyn_minus], axis=1)
        neg_minus = jnp.concatenate([stat_neg, neg_dyn_minus], axis=1)
        new_items = jnp.concatenate([stat_items, new_items_dyn], axis=1)

        result = {}  # is_train = True path

        # NOTE: the reference's intermediate users_minus/items_minus memory write
        # is only observable on the eval (is_train=False) path; on the train path
        # it is overwritten before any read, so it is elided here (dead work).
        # TODO(synk): duplicate indices in one batch get an unspecified winner
        # (same as torch index assignment on GPU), unlike a sequential loop.
        nodes = memory["nodes"].at[users_idxs].set(new_users)
        nodes = nodes.at[items_idxs].set(new_items)
        last_update = memory["last_update"].at[users_idxs].set(timestamps)
        last_update = last_update.at[items_idxs].set(timestamps)
        new_memory = {
            "nodes": nodes,
            "crowds": memory["crowds"].at[users_idxs].set(crowds_new),
            "interests": memory["interests"].at[users_idxs].set(interests_new),
            "categories": memory["categories"].at[users_idxs].set(categories_new),
            "brands": memory["brands"].at[users_idxs].set(brands_new),
            "last_update": last_update,
        }
        return users_minus, items_minus, neg_minus, result, new_memory

    # Donate the memory tables so the scatters update in place.
    return jax.jit(forward, donate_argnums=(1,))


# ----------------------------------------------------------------------------
if __name__ == "__main__":
    cfg = dict(
        users_num=16, items_num=16, nodes_dim=32, time_dim=32, llm_dim=64,
        prune_k=8, num_heads=2,
        mean_time_shift_users=1.0, std_time_shift_users=2.0,
    )
    n_samples = 8

    key = jax.random.PRNGKey(0)
    k_par, k_mem, k1, k2, k3, k4, k5, k6, k7, k8, k9 = jax.random.split(key, 11)

    params = init_params(k_par, cfg)
    packs = pack_params(params, cfg)          # one-time host-side packing
    memory = init_memory(k_mem, cfg)

    users_idxs = jax.random.randint(k1, (n_samples,), 0, cfg["users_num"], jnp.int32)
    items_idxs = jax.random.randint(
        k2, (n_samples,), cfg["users_num"], cfg["users_num"] + cfg["items_num"], jnp.int32)
    neg_idxs = jax.random.randint(
        k3, (n_samples,), cfg["users_num"], cfg["users_num"] + cfg["items_num"], jnp.int32)

    items_static_raw = jax.random.normal(k4, (cfg["items_num"], cfg["llm_dim"]), jnp.float32)
    crowds_f = jax.random.normal(k5, (n_samples, cfg["llm_dim"]), jnp.float32)
    interests_f = jax.random.normal(k6, (n_samples, cfg["llm_dim"]), jnp.float32)
    categories_f = jax.random.normal(k7, (n_samples, cfg["llm_dim"]), jnp.float32)
    brands_f = jax.random.normal(k8, (n_samples, cfg["llm_dim"]), jnp.float32)
    timestamps = jax.random.uniform(k9, (n_samples,), jnp.float32, 0.0, 100.0)

    forward = make_forward(cfg)
    users_minus, items_minus, neg_minus, result, new_memory = forward(
        packs, memory, users_idxs, items_idxs, neg_idxs,
        items_static_raw, crowds_f, interests_f, categories_f, brands_f, timestamps)

    jax.block_until_ready((users_minus, items_minus, neg_minus, new_memory))
    assert users_minus.shape == (n_samples, cfg["nodes_dim"])
    assert items_minus.shape == (n_samples, cfg["nodes_dim"])
    assert neg_minus.shape == (n_samples, cfg["nodes_dim"])
    assert new_memory["nodes"].shape == (cfg["users_num"] + cfg["items_num"], cfg["nodes_dim"])
    assert bool(jnp.isfinite(users_minus).all())
    print("KERNEL_OK")
</pallas_src>

<mosaic_0001>
module attributes {stable_mosaic.version = 11 : i64} {
  func.func @_event_kernel(%arg0: i32, %arg1: memref<4x8x32xf32, #tpu.memory_space<vmem>>, %arg2: memref<4x8x8xf32, #tpu.memory_space<vmem>>, %arg3: memref<2x8x64xf32, #tpu.memory_space<vmem>>, %arg4: memref<4x8x64xf32, #tpu.memory_space<vmem>>, %arg5: memref<18x64xf32, #tpu.memory_space<vmem>>, %arg6: memref<680x32xf32, #tpu.memory_space<vmem>>, %arg7: memref<160x16xf32, #tpu.memory_space<vmem>>, %arg8: memref<8x64xf32, #tpu.memory_space<vmem>>, %arg9: memref<8x1408xf32, #tpu.memory_space<vmem>>) attributes {dimension_semantics = [#tpu.dimension_semantics<parallel>], iteration_bounds = array<i64: 1>, scalar_prefetch = 0 : i64, scratch_operands = 0 : i64, tpu.core_type = #tpu.core_type<tc>, window_params = [{transform_indices = @transform_0, window_bounds = array<i64: 4, 8, 32>}, {transform_indices = @transform_1, window_bounds = array<i64: 4, 8, 8>}, {transform_indices = @transform_2, window_bounds = array<i64: 2, 8, 64>}, {transform_indices = @transform_3, window_bounds = array<i64: 4, 8, 64>}, {pipeline_mode = #tpu.pipeline_mode<synchronous>, transform_indices = @transform_4, window_bounds = array<i64: 18, 64>}, {pipeline_mode = #tpu.pipeline_mode<synchronous>, transform_indices = @transform_5, window_bounds = array<i64: 680, 32>}, {pipeline_mode = #tpu.pipeline_mode<synchronous>, transform_indices = @transform_6, window_bounds = array<i64: 160, 16>}, {pipeline_mode = #tpu.pipeline_mode<synchronous>, transform_indices = @transform_7, window_bounds = array<i64: 8, 64>}, {transform_indices = @transform_8, window_bounds = array<i64: 8, 1408>}]} {
    %c0 = arith.constant 0 : index
    %c0_0 = arith.constant 0 : index
    %c0_1 = arith.constant 0 : index
    %0 = vector.load %arg1[%c0, %c0_0, %c0_1] : memref<4x8x32xf32, #tpu.memory_space<vmem>>, vector<3x8x32xf32>
    %1 = vector.shape_cast %0 : vector<3x8x32xf32> to vector<24x32xf32>
    %2 = vector.extract_strided_slice %1 {offsets = [0, 0], sizes = [8, 32], strides = [1, 1]} : vector<24x32xf32> to vector<8x32xf32>
    %c3 = arith.constant 3 : index
    %c0_2 = arith.constant 0 : index
    %c0_3 = arith.constant 0 : index
    %3 = vector.load %arg1[%c3, %c0_2, %c0_3] : memref<4x8x32xf32, #tpu.memory_space<vmem>>, vector<1x8x1xf32>
    %4 = vector.shape_cast %3 : vector<1x8x1xf32> to vector<8x1xf32>
    %c0_4 = arith.constant 0 : index
    %c0_5 = arith.constant 0 : index
    %c0_6 = arith.constant 0 : index
    %5 = vector.load %arg3[%c0_4, %c0_5, %c0_6] : memref<2x8x64xf32, #tpu.memory_space<vmem>>, vector<2x8x64xf32>
    %6 = vector.shape_cast %5 : vector<2x8x64xf32> to vector<16x64xf32>
    %c0_7 = arith.constant 0 : index
    %c0_8 = arith.constant 0 : index
    %7 = vector.load %arg7[%c0_7, %c0_8] : memref<160x16xf32, #tpu.memory_space<vmem>>, vector<64x16xf32>
    %cst = arith.constant dense<0.000000e+00> : vector<16x16xf32>
    %8 = tpu.matmul %6, %7, %cst {dimension_numbers = #tpu.dot_dimension_numbers<[1], [0], [0], [1], [0, 0, 1, 1], [], []>} : vector<16x64xf32>, vector<64x16xf32>, vector<16x16xf32> -> vector<16x16xf32>
    %c3_9 = arith.constant 3 : index
    %c0_10 = arith.constant 0 : index
    %9 = vector.load %arg5[%c3_9, %c0_10] : memref<18x64xf32, #tpu.memory_space<vmem>>, vector<1x16xf32>
    %10 = vector.broadcast %9 : vector<1x16xf32> to vector<16x16xf32>
    %11 = arith.addf %8, %10 : vector<16x16xf32>
    %cst_11 = arith.constant dense<0.000000e+00> : vector<16xf32>
    %12 = vector.multi_reduction <add>, %11, %cst_11 [1] : vector<16x16xf32> to vector<16xf32>
    %13 = vector.shape_cast %12 : vector<16xf32> to vector<16x1xf32>
    %cst_12 = arith.constant 1.600000e+01 : f32
    %14 = vector.broadcast %cst_12 : f32 to vector<16x1xf32>
    %15 = arith.divf %13, %14 : vector<16x1xf32>
    %16 = vector.broadcast %15 : vector<16x1xf32> to vector<16x16xf32>
    %17 = arith.subf %11, %16 : vector<16x16xf32>
    %18 = arith.mulf %17, %17 : vector<16x16xf32>
    %cst_13 = arith.constant dense<0.000000e+00> : vector<16xf32>
    %19 = vector.multi_reduction <add>, %18, %cst_13 [1] : vector<16x16xf32> to vector<16xf32>
    %20 = vector.shape_cast %19 : vector<16xf32> to vector<16x1xf32>
    %cst_14 = arith.constant 1.600000e+01 : f32
    %21 = vector.broadcast %cst_14 : f32 to vector<16x1xf32>
    %22 = arith.divf %20, %21 : vector<16x1xf32>
    %23 = vector.broadcast %15 : vector<16x1xf32> to vector<16x16xf32>
    %24 = arith.subf %11, %23 : vector<16x16xf32>
    %cst_15 = arith.constant 9.99999974E-6 : f32
    %25 = vector.broadcast %cst_15 : f32 to vector<16x1xf32>
    %26 = arith.addf %22, %25 : vector<16x1xf32>
    %27 = math.rsqrt %26 : vector<16x1xf32>
    %28 = vector.broadcast %27 : vector<16x1xf32> to vector<16x16xf32>
    %29 = arith.mulf %24, %28 : vector<16x16xf32>
    %30 = vector.extract_strided_slice %29 {offsets = [0, 0], sizes = [8, 16], strides = [1, 1]} : vector<16x16xf32> to vector<8x16xf32>
    %31 = vector.extract_strided_slice %29 {offsets = [8, 0], sizes = [8, 16], strides = [1, 1]} : vector<16x16xf32> to vector<8x16xf32>
    %c0_16 = arith.constant 0 : index
    %c0_17 = arith.constant 0 : index
    %32 = vector.load %arg6[%c0_16, %c0_17] : memref<680x32xf32, #tpu.memory_space<vmem>>, vector<32x32xf32>
    %cst_18 = arith.constant dense<0.000000e+00> : vector<24x32xf32>
    %33 = tpu.matmul %1, %32, %cst_18 {dimension_numbers = #tpu.dot_dimension_numbers<[1], [0], [0], [1], [0, 0, 1, 1], [], []>} : vector<24x32xf32>, vector<32x32xf32>, vector<24x32xf32> -> vector<24x32xf32>
    %c4 = arith.constant 4 : index
    %c0_19 = arith.constant 0 : index
    %34 = vector.load %arg5[%c4, %c0_19] : memref<18x64xf32, #tpu.memory_space<vmem>>, vector<1x32xf32>
    %35 = vector.broadcast %34 : vector<1x32xf32> to vector<24x32xf32>
    %36 = arith.addf %33, %35 : vector<24x32xf32>
    %cst_20 = arith.constant 0.000000e+00 : f32
    %37 = vector.broadcast %cst_20 : f32 to vector<24x32xf32>
    %38 = arith.maximumf %36, %37 : vector<24x32xf32>
    %39 = vector.extract_strided_slice %38 {offsets = [0, 0], sizes = [8, 32], strides = [1, 1]} : vector<24x32xf32> to vector<8x32xf32>
    %40 = vector.extract_strided_slice %38 {offsets = [8, 0], sizes = [16, 32], strides = [1, 1]} : vector<24x32xf32> to vector<16x32xf32>
    %c0_21 = arith.constant 0 : index
    %c0_22 = arith.constant 0 : index
    %41 = vector.load %arg5[%c0_21, %c0_22] : memref<18x64xf32, #tpu.memory_space<vmem>>, vector<1x32xf32>
    %42 = vector.broadcast %4 : vector<8x1xf32> to vector<8x32xf32>
    %43 = vector.broadcast %41 : vector<1x32xf32> to vector<8x32xf32>
    %44 = arith.mulf %42, %43 : vector<8x32xf32>
    %cst_23 = arith.constant 1.000000e+00 : f32
    %45 = vector.broadcast %cst_23 : f32 to vector<8x32xf32>
    %46 = arith.addf %45, %44 : vector<8x32xf32>
    %47 = arith.mulf %2, %46 : vector<8x32xf32>
    %cst_24 = arith.constant dense<0.000000e+00> : vector<8xf32>
    %48 = vector.multi_reduction <add>, %47, %cst_24 [1] : vector<8x32xf32> to vector<8xf32>
    %49 = vector.shape_cast %48 : vector<8xf32> to vector<8x1xf32>
    %cst_25 = arith.constant 3.200000e+01 : f32
    %50 = vector.broadcast %cst_25 : f32 to vector<8x1xf32>
    %51 = arith.divf %49, %50 : vector<8x1xf32>
    %52 = vector.broadcast %51 : vector<8x1xf32> to vector<8x32xf32>
    %53 = arith.subf %47, %52 : vector<8x32xf32>
    %54 = arith.mulf %53, %53 : vector<8x32xf32>
    %cst_26 = arith.constant dense<0.000000e+00> : vector<8xf32>
    %55 = vector.multi_reduction <add>, %54, %cst_26 [1] : vector<8x32xf32> to vector<8xf32>
    %56 = vector.shape_cast %55 : vector<8xf32> to vector<8x1xf32>
    %cst_27 = arith.constant 3.200000e+01 : f32
    %57 = vector.broadcast %cst_27 : f32 to vector<8x1xf32>
    %58 = arith.divf %56, %57 : vector<8x1xf32>
    %59 = vector.broadcast %51 : vector<8x1xf32> to vector<8x32xf32>
    %60 = arith.subf %47, %59 : vector<8x32xf32>
    %cst_28 = arith.constant 9.99999974E-6 : f32
    %61 = vector.broadcast %cst_28 : f32 to vector<8x1xf32>
    %62 = arith.addf %58, %61 : vector<8x1xf32>
    %63 = math.rsqrt %62 : vector<8x1xf32>
    %64 = vector.broadcast %63 : vector<8x1xf32> to vector<8x32xf32>
    %65 = arith.mulf %60, %64 : vector<8x32xf32>
    %c32 = arith.constant 32 : index
    %c0_29 = arith.constant 0 : index
    %66 = vector.load %arg6[%c32, %c0_29] : memref<680x32xf32, #tpu.memory_space<vmem>>, vector<32x32xf32>
    %cst_30 = arith.constant dense<0.000000e+00> : vector<8x32xf32>
    %67 = tpu.matmul %2, %66, %cst_30 {dimension_numbers = #tpu.dot_dimension_numbers<[1], [0], [0], [1], [0, 0, 1, 1], [], []>} : vector<8x32xf32>, vector<32x32xf32>, vector<8x32xf32> -> vector<8x32xf32>
    %c64 = arith.constant 64 : index
    %c0_31 = arith.constant 0 : index
    %68 = vector.load %arg6[%c64, %c0_31] : memref<680x32xf32, #tpu.memory_space<vmem>>, vector<32x32xf32>
    %cst_32 = arith.constant dense<0.000000e+00> : vector<8x32xf32>
    %69 = tpu.matmul %39, %68, %cst_32 {dimension_numbers = #tpu.dot_dimension_numbers<[1], [0], [0], [1], [0, 0, 1, 1], [], []>} : vector<8x32xf32>, vector<32x32xf32>, vector<8x32xf32> -> vector<8x32xf32>
    %70 = arith.addf %67, %69 : vector<8x32xf32>
    %c96 = arith.constant 96 : index
    %c0_33 = arith.constant 0 : index
    %71 = vector.load %arg6[%c96, %c0_33] : memref<680x32xf32, #tpu.memory_space<vmem>>, vector<32x32xf32>
    %cst_34 = arith.constant dense<0.000000e+00> : vector<8x32xf32>
    %72 = tpu.matmul %65, %71, %cst_34 {dimension_numbers = #tpu.dot_dimension_numbers<[1], [0], [0], [1], [0, 0, 1, 1], [], []>} : vector<8x32xf32>, vector<32x32xf32>, vector<8x32xf32> -> vector<8x32xf32>
    %73 = arith.addf %70, %72 : vector<8x32xf32>
    %c5 = arith.constant 5 : index
    %c0_35 = arith.constant 0 : index
    %74 = vector.load %arg5[%c5, %c0_35] : memref<18x64xf32, #tpu.memory_space<vmem>>, vector<1x32xf32>
    %75 = vector.broadcast %74 : vector<1x32xf32> to vector<8x32xf32>
    %76 = arith.addf %73, %75 : vector<8x32xf32>
    %c128 = arith.constant 128 : index
    %c0_36 = arith.constant 0 : index
    %77 = vector.load %arg6[%c128, %c0_36] : memref<680x32xf32, #tpu.memory_space<vmem>>, vector<32x32xf32>
    %cst_37 = arith.constant dense<0.000000e+00> : vector<8x32xf32>
    %78 = tpu.matmul %76, %77, %cst_37 {dimension_numbers = #tpu.dot_dimension_numbers<[1], [0], [0], [1], [0, 0, 1, 1], [], []>} : vector<8x32xf32>, vector<32x32xf32>, vector<8x32xf32> -> vector<8x32xf32>
    %c6 = arith.constant 6 : index
    %c0_38 = arith.constant 0 : index
    %79 = vector.load %arg5[%c6, %c0_38] : memref<18x64xf32, #tpu.memory_space<vmem>>, vector<1x32xf32>
    %80 = vector.broadcast %79 : vector<1x32xf32> to vector<8x32xf32>
    %81 = arith.addf %78, %80 : vector<8x32xf32>
    %c0_39 = arith.constant 0 : index
    %c0_40 = arith.constant 0 : index
    %c0_41 = arith.constant 0 : index
    %82 = vector.load %arg2[%c0_39, %c0_40, %c0_41] : memref<4x8x8xf32, #tpu.memory_space<vmem>>, vector<4x8x8xf32>
    %83 = vector.shape_cast %82 : vector<4x8x8xf32> to vector<32x8xf32>
    %c0_42 = arith.constant 0 : index
    %c0_43 = arith.constant 0 : index
    %84 = vector.load %arg8[%c0_42, %c0_43] : memref<8x64xf32, #tpu.memory_space<vmem>>, vector<8x64xf32>
    %cst_44 = arith.constant dense<0.000000e+00> : vector<32x64xf32>
    %85 = tpu.matmul %83, %84, %cst_44 {dimension_numbers = #tpu.dot_dimension_numbers<[1], [0], [0], [1], [0, 0, 1, 1], [], []>} : vector<32x8xf32>, vector<8x64xf32>, vector<32x64xf32> -> vector<32x64xf32>
    %c7 = arith.constant 7 : index
    %c0_45 = arith.constant 0 : index
    %86 = vector.load %arg5[%c7, %c0_45] : memref<18x64xf32, #tpu.memory_space<vmem>>, vector<1x64xf32>
    %87 = vector.broadcast %86 : vector<1x64xf32> to vector<32x64xf32>
    %88 = arith.addf %85, %87 : vector<32x64xf32>
    %89 = vector.extract_strided_slice %88 {offsets = [0, 0], sizes = [32, 32], strides = [1, 1]} : vector<32x64xf32> to vector<32x32xf32>
    %90 = vector.shape_cast %89 : vector<32x32xf32> to vector<4x8x32xf32>
    %91 = vector.extract_strided_slice %88 {offsets = [0, 32], sizes = [32, 32], strides = [1, 1]} : vector<32x64xf32> to vector<32x32xf32>
    %92 = vector.shape_cast %91 : vector<32x32xf32> to vector<4x8x32xf32>
    %c648 = arith.constant 648 : index
    %c0_46 = arith.constant 0 : index
    %93 = vector.load %arg6[%c648, %c0_46] : memref<680x32xf32, #tpu.memory_space<vmem>>, vector<32x2xf32>
    %c640 = arith.constant 640 : index
    %c0_47 = arith.constant 0 : index
    %94 = vector.load %arg6[%c640, %c0_47] : memref<680x32xf32, #tpu.memory_space<vmem>>, vector<2x32xf32>
    %95 = vector.shape_cast %81 : vector<8x32xf32> to vector<1x8x32xf32>
    %96 = vector.broadcast %95 : vector<1x8x32xf32> to vector<4x8x32xf32>
    %97 = arith.mulf %96, %90 : vector<4x8x32xf32>
    %98 = vector.shape_cast %97 : vector<4x8x32xf32> to vector<32x32xf32>
    %cst_48 = arith.constant dense<0.000000e+00> : vector<32x2xf32>
    %99 = tpu.matmul %98, %93, %cst_48 {dimension_numbers = #tpu.dot_dimension_numbers<[1], [0], [0], [1], [0, 0, 1, 1], [], []>} : vector<32x32xf32>, vector<32x2xf32>, vector<32x2xf32> -> vector<32x2xf32>
    %cst_49 = arith.constant 2.500000e-01 : f32
    %100 = vector.broadcast %cst_49 : f32 to vector<32x2xf32>
    %101 = arith.mulf %99, %100 : vector<32x2xf32>
    %102 = vector.shape_cast %101 : vector<32x2xf32> to vector<4x8x2xf32>
    %103 = vector.extract_strided_slice %102 {offsets = [0, 0, 0], sizes = [1, 8, 2], strides = [1, 1, 1]} : vector<4x8x2xf32> to vector<1x8x2xf32>
    %104 = vector.shape_cast %103 : vector<1x8x2xf32> to vector<8x2xf32>
    %105 = vector.extract_strided_slice %102 {offsets = [1, 0, 0], sizes = [1, 8, 2], strides = [1, 1, 1]} : vector<4x8x2xf32> to vector<1x8x2xf32>
    %106 = vector.shape_cast %105 : vector<1x8x2xf32> to vector<8x2xf32>
    %107 = arith.maximumf %104, %106 : vector<8x2xf32>
    %108 = vector.extract_strided_slice %102 {offsets = [2, 0, 0], sizes = [1, 8, 2], strides = [1, 1, 1]} : vector<4x8x2xf32> to vector<1x8x2xf32>
    %109 = vector.shape_cast %108 : vector<1x8x2xf32> to vector<8x2xf32>
    %110 = arith.maximumf %107, %109 : vector<8x2xf32>
    %111 = vector.extract_strided_slice %102 {offsets = [3, 0, 0], sizes = [1, 8, 2], strides = [1, 1, 1]} : vector<4x8x2xf32> to vector<1x8x2xf32>
    %112 = vector.shape_cast %111 : vector<1x8x2xf32> to vector<8x2xf32>
    %113 = arith.maximumf %110, %112 : vector<8x2xf32>
    %114 = vector.shape_cast %113 : vector<8x2xf32> to vector<1x8x2xf32>
    %115 = vector.broadcast %114 : vector<1x8x2xf32> to vector<4x8x2xf32>
    %116 = arith.subf %102, %115 : vector<4x8x2xf32>
    %117 = math.exp %116 : vector<4x8x2xf32>
    %118 = vector.extract_strided_slice %117 {offsets = [0, 0, 0], sizes = [1, 8, 2], strides = [1, 1, 1]} : vector<4x8x2xf32> to vector<1x8x2xf32>
    %119 = vector.shape_cast %118 : vector<1x8x2xf32> to vector<8x2xf32>
    %120 = vector.extract_strided_slice %117 {offsets = [1, 0, 0], sizes = [1, 8, 2], strides = [1, 1, 1]} : vector<4x8x2xf32> to vector<1x8x2xf32>
    %121 = vector.shape_cast %120 : vector<1x8x2xf32> to vector<8x2xf32>
    %122 = arith.addf %119, %121 : vector<8x2xf32>
    %123 = vector.extract_strided_slice %117 {offsets = [2, 0, 0], sizes = [1, 8, 2], strides = [1, 1, 1]} : vector<4x8x2xf32> to vector<1x8x2xf32>
    %124 = vector.shape_cast %123 : vector<1x8x2xf32> to vector<8x2xf32>
    %125 = arith.addf %122, %124 : vector<8x2xf32>
    %126 = vector.extract_strided_slice %117 {offsets = [3, 0, 0], sizes = [1, 8, 2], strides = [1, 1, 1]} : vector<4x8x2xf32> to vector<1x8x2xf32>
    %127 = vector.shape_cast %126 : vector<1x8x2xf32> to vector<8x2xf32>
    %128 = arith.addf %125, %127 : vector<8x2xf32>
    %129 = tpu.reciprocal %128 : vector<8x2xf32> -> vector<8x2xf32>
    %130 = vector.shape_cast %129 : vector<8x2xf32> to vector<1x8x2xf32>
    %131 = vector.broadcast %130 : vector<1x8x2xf32> to vector<4x8x2xf32>
    %132 = arith.mulf %117, %131 : vector<4x8x2xf32>
    %133 = vector.shape_cast %132 : vector<4x8x2xf32> to vector<32x2xf32>
    %cst_50 = arith.constant dense<0.000000e+00> : vector<32x32xf32>
    %134 = tpu.matmul %133, %94, %cst_50 {dimension_numbers = #tpu.dot_dimension_numbers<[1], [0], [0], [1], [0, 0, 1, 1], [], []>} : vector<32x2xf32>, vector<2x32xf32>, vector<32x32xf32> -> vector<32x32xf32>
    %135 = vector.shape_cast %134 : vector<32x32xf32> to vector<4x8x32xf32>
    %136 = vector.extract_strided_slice %135 {offsets = [0, 0, 0], sizes = [1, 8, 32], strides = [1, 1, 1]} : vector<4x8x32xf32> to vector<1x8x32xf32>
    %137 = vector.shape_cast %136 : vector<1x8x32xf32> to vector<8x32xf32>
    %138 = vector.extract_strided_slice %92 {offsets = [0, 0, 0], sizes = [1, 8, 32], strides = [1, 1, 1]} : vector<4x8x32xf32> to vector<1x8x32xf32>
    %139 = vector.shape_cast %138 : vector<1x8x32xf32> to vector<8x32xf32>
    %140 = arith.mulf %137, %139 : vector<8x32xf32>
    %141 = vector.extract_strided_slice %135 {offsets = [1, 0, 0], sizes = [1, 8, 32], strides = [1, 1, 1]} : vector<4x8x32xf32> to vector<1x8x32xf32>
    %142 = vector.shape_cast %141 : vector<1x8x32xf32> to vector<8x32xf32>
    %143 = vector.extract_strided_slice %92 {offsets = [1, 0, 0], sizes = [1, 8, 32], strides = [1, 1, 1]} : vector<4x8x32xf32> to vector<1x8x32xf32>
    %144 = vector.shape_cast %143 : vector<1x8x32xf32> to vector<8x32xf32>
    %145 = arith.mulf %142, %144 : vector<8x32xf32>
    %146 = arith.addf %140, %145 : vector<8x32xf32>
    %147 = vector.extract_strided_slice %135 {offsets = [2, 0, 0], sizes = [1, 8, 32], strides = [1, 1, 1]} : vector<4x8x32xf32> to vector<1x8x32xf32>
    %148 = vector.shape_cast %147 : vector<1x8x32xf32> to vector<8x32xf32>
    %149 = vector.extract_strided_slice %92 {offsets = [2, 0, 0], sizes = [1, 8, 32], strides = [1, 1, 1]} : vector<4x8x32xf32> to vector<1x8x32xf32>
    %150 = vector.shape_cast %149 : vector<1x8x32xf32> to vector<8x32xf32>
    %151 = arith.mulf %148, %150 : vector<8x32xf32>
    %152 = arith.addf %146, %151 : vector<8x32xf32>
    %153 = vector.extract_strided_slice %135 {offsets = [3, 0, 0], sizes = [1, 8, 32], strides = [1, 1, 1]} : vector<4x8x32xf32> to vector<1x8x32xf32>
    %154 = vector.shape_cast %153 : vector<1x8x32xf32> to vector<8x32xf32>
    %155 = vector.extract_strided_slice %92 {offsets = [3, 0, 0], sizes = [1, 8, 32], strides = [1, 1, 1]} : vector<4x8x32xf32> to vector<1x8x32xf32>
    %156 = vector.shape_cast %155 : vector<1x8x32xf32> to vector<8x32xf32>
    %157 = arith.mulf %154, %156 : vector<8x32xf32>
    %158 = arith.addf %152, %157 : vector<8x32xf32>
    %c160 = arith.constant 160 : index
    %c0_51 = arith.constant 0 : index
    %159 = vector.load %arg6[%c160, %c0_51] : memref<680x32xf32, #tpu.memory_space<vmem>>, vector<32x32xf32>
    %cst_52 = arith.constant dense<0.000000e+00> : vector<8x32xf32>
    %160 = tpu.matmul %158, %159, %cst_52 {dimension_numbers = #tpu.dot_dimension_numbers<[1], [0], [0], [1], [0, 0, 1, 1], [], []>} : vector<8x32xf32>, vector<32x32xf32>, vector<8x32xf32> -> vector<8x32xf32>
    %c8 = arith.constant 8 : index
    %c0_53 = arith.constant 0 : index
    %161 = vector.load %arg5[%c8, %c0_53] : memref<18x64xf32, #tpu.memory_space<vmem>>, vector<1x32xf32>
    %162 = vector.broadcast %161 : vector<1x32xf32> to vector<8x32xf32>
    %163 = arith.addf %160, %162 : vector<8x32xf32>
    %c192 = arith.constant 192 : index
    %c0_54 = arith.constant 0 : index
    %164 = vector.load %arg6[%c192, %c0_54] : memref<680x32xf32, #tpu.memory_space<vmem>>, vector<32x32xf32>
    %cst_55 = arith.constant dense<0.000000e+00> : vector<8x32xf32>
    %165 = tpu.matmul %76, %164, %cst_55 {dimension_numbers = #tpu.dot_dimension_numbers<[1], [0], [0], [1], [0, 0, 1, 1], [], []>} : vector<8x32xf32>, vector<32x32xf32>, vector<8x32xf32> -> vector<8x32xf32>
    %c224 = arith.constant 224 : index
    %c0_56 = arith.constant 0 : index
    %166 = vector.load %arg6[%c224, %c0_56] : memref<680x32xf32, #tpu.memory_space<vmem>>, vector<32x32xf32>
    %cst_57 = arith.constant dense<0.000000e+00> : vector<8x32xf32>
    %167 = tpu.matmul %163, %166, %cst_57 {dimension_numbers = #tpu.dot_dimension_numbers<[1], [0], [0], [1], [0, 0, 1, 1], [], []>} : vector<8x32xf32>, vector<32x32xf32>, vector<8x32xf32> -> vector<8x32xf32>
    %168 = arith.addf %165, %167 : vector<8x32xf32>
    %c9 = arith.constant 9 : index
    %c0_58 = arith.constant 0 : index
    %169 = vector.load %arg5[%c9, %c0_58] : memref<18x64xf32, #tpu.memory_space<vmem>>, vector<1x32xf32>
    %170 = vector.broadcast %169 : vector<1x32xf32> to vector<8x32xf32>
    %171 = arith.addf %168, %170 : vector<8x32xf32>
    %cst_59 = arith.constant 0.000000e+00 : f32
    %172 = vector.broadcast %cst_59 : f32 to vector<8x32xf32>
    %173 = arith.maximumf %171, %172 : vector<8x32xf32>
    %c256 = arith.constant 256 : index
    %c0_60 = arith.constant 0 : index
    %174 = vector.load %arg6[%c256, %c0_60] : memref<680x32xf32, #tpu.memory_space<vmem>>, vector<32x32xf32>
    %cst_61 = arith.constant dense<0.000000e+00> : vector<8x32xf32>
    %175 = tpu.matmul %173, %174, %cst_61 {dimension_numbers = #tpu.dot_dimension_numbers<[1], [0], [0], [1], [0, 0, 1, 1], [], []>} : vector<8x32xf32>, vector<32x32xf32>, vector<8x32xf32> -> vector<8x32xf32>
    %c10 = arith.constant 10 : index
    %c0_62 = arith.constant 0 : index
    %176 = vector.load %arg5[%c10, %c0_62] : memref<18x64xf32, #tpu.memory_space<vmem>>, vector<1x32xf32>
    %177 = vector.broadcast %176 : vector<1x32xf32> to vector<8x32xf32>
    %178 = arith.addf %175, %177 : vector<8x32xf32>
    %c1 = arith.constant 1 : index
    %c0_63 = arith.constant 0 : index
    %c16 = arith.constant 16 : index
    %179 = vector.load %arg1[%c1, %c0_63, %c16] : memref<4x8x32xf32, #tpu.memory_space<vmem>>, vector<2x8x16xf32>
    %180 = vector.shape_cast %179 : vector<2x8x16xf32> to vector<16x16xf32>
    %c64_64 = arith.constant 64 : index
    %c0_65 = arith.constant 0 : index
    %181 = vector.load %arg7[%c64_64, %c0_65] : memref<160x16xf32, #tpu.memory_space<vmem>>, vector<16x16xf32>
    %cst_66 = arith.constant dense<0.000000e+00> : vector<16x16xf32>
    %182 = tpu.matmul %180, %181, %cst_66 {dimension_numbers = #tpu.dot_dimension_numbers<[1], [0], [0], [1], [0, 0, 1, 1], [], []>} : vector<16x16xf32>, vector<16x16xf32>, vector<16x16xf32> -> vector<16x16xf32>
    %c80 = arith.constant 80 : index
    %c0_67 = arith.constant 0 : index
    %183 = vector.load %arg7[%c80, %c0_67] : memref<160x16xf32, #tpu.memory_space<vmem>>, vector<32x16xf32>
    %cst_68 = arith.constant dense<0.000000e+00> : vector<16x16xf32>
    %184 = tpu.matmul %40, %183, %cst_68 {dimension_numbers = #tpu.dot_dimension_numbers<[1], [0], [0], [1], [0, 0, 1, 1], [], []>} : vector<16x32xf32>, vector<32x16xf32>, vector<16x16xf32> -> vector<16x16xf32>
    %185 = arith.addf %182, %184 : vector<16x16xf32>
    %c11 = arith.constant 11 : index
    %c0_69 = arith.constant 0 : index
    %186 = vector.load %arg5[%c11, %c0_69] : memref<18x64xf32, #tpu.memory_space<vmem>>, vector<1x16xf32>
    %187 = vector.broadcast %186 : vector<1x16xf32> to vector<16x16xf32>
    %188 = arith.addf %185, %187 : vector<16x16xf32>
    %189 = vector.extract_strided_slice %188 {offsets = [0, 0], sizes = [8, 16], strides = [1, 1]} : vector<16x16xf32> to vector<8x16xf32>
    %190 = vector.extract_strided_slice %188 {offsets = [8, 0], sizes = [8, 16], strides = [1, 1]} : vector<16x16xf32> to vector<8x16xf32>
    %c1_70 = arith.constant 1 : index
    %c0_71 = arith.constant 0 : index
    %191 = vector.load %arg5[%c1_70, %c0_71] : memref<18x64xf32, #tpu.memory_space<vmem>>, vector<1x32xf32>
    %192 = vector.broadcast %4 : vector<8x1xf32> to vector<8x32xf32>
    %193 = vector.broadcast %191 : vector<1x32xf32> to vector<8x32xf32>
    %194 = arith.mulf %192, %193 : vector<8x32xf32>
    %c2 = arith.constant 2 : index
    %c0_72 = arith.constant 0 : index
    %195 = vector.load %arg5[%c2, %c0_72] : memref<18x64xf32, #tpu.memory_space<vmem>>, vector<1x32xf32>
    %196 = vector.broadcast %195 : vector<1x32xf32> to vector<8x32xf32>
    %197 = arith.addf %194, %196 : vector<8x32xf32>
    %198 = math.cos %197 : vector<8x32xf32>
    %c288 = arith.constant 288 : index
    %c0_73 = arith.constant 0 : index
    %199 = vector.load %arg6[%c288, %c0_73] : memref<680x32xf32, #tpu.memory_space<vmem>>, vector<32x32xf32>
    %cst_74 = arith.constant dense<0.000000e+00> : vector<8x32xf32>
    %200 = tpu.matmul %178, %199, %cst_74 {dimension_numbers = #tpu.dot_dimension_numbers<[1], [0], [0], [1], [0, 0, 1, 1], [], []>} : vector<8x32xf32>, vector<32x32xf32>, vector<8x32xf32> -> vector<8x32xf32>
    %c320 = arith.constant 320 : index
    %c0_75 = arith.constant 0 : index
    %201 = vector.load %arg6[%c320, %c0_75] : memref<680x32xf32, #tpu.memory_space<vmem>>, vector<16x32xf32>
    %cst_76 = arith.constant dense<0.000000e+00> : vector<8x32xf32>
    %202 = tpu.matmul %30, %201, %cst_76 {dimension_numbers = #tpu.dot_dimension_numbers<[1], [0], [0], [1], [0, 0, 1, 1], [], []>} : vector<8x16xf32>, vector<16x32xf32>, vector<8x32xf32> -> vector<8x32xf32>
    %203 = arith.addf %200, %202 : vector<8x32xf32>
    %c336 = arith.constant 336 : index
    %c0_77 = arith.constant 0 : index
    %204 = vector.load %arg6[%c336, %c0_77] : memref<680x32xf32, #tpu.memory_space<vmem>>, vector<16x32xf32>
    %cst_78 = arith.constant dense<0.000000e+00> : vector<8x32xf32>
    %205 = tpu.matmul %189, %204, %cst_78 {dimension_numbers = #tpu.dot_dimension_numbers<[1], [0], [0], [1], [0, 0, 1, 1], [], []>} : vector<8x16xf32>, vector<16x32xf32>, vector<8x32xf32> -> vector<8x32xf32>
    %206 = arith.addf %203, %205 : vector<8x32xf32>
    %c352 = arith.constant 352 : index
    %c0_79 = arith.constant 0 : index
    %207 = vector.load %arg6[%c352, %c0_79] : memref<680x32xf32, #tpu.memory_space<vmem>>, vector<32x32xf32>
    %cst_80 = arith.constant dense<0.000000e+00> : vector<8x32xf32>
    %208 = tpu.matmul %198, %207, %cst_80 {dimension_numbers = #tpu.dot_dimension_numbers<[1], [0], [0], [1], [0, 0, 1, 1], [], []>} : vector<8x32xf32>, vector<32x32xf32>, vector<8x32xf32> -> vector<8x32xf32>
    %209 = arith.addf %206, %208 : vector<8x32xf32>
    %c12 = arith.constant 12 : index
    %c0_81 = arith.constant 0 : index
    %210 = vector.load %arg5[%c12, %c0_81] : memref<18x64xf32, #tpu.memory_space<vmem>>, vector<1x32xf32>
    %211 = vector.broadcast %210 : vector<1x32xf32> to vector<8x32xf32>
    %212 = arith.addf %209, %211 : vector<8x32xf32>
    %cst_82 = arith.constant dense<0.000000e+00> : vector<8xf32>
    %213 = vector.multi_reduction <add>, %212, %cst_82 [1] : vector<8x32xf32> to vector<8xf32>
    %214 = vector.shape_cast %213 : vector<8xf32> to vector<8x1xf32>
    %cst_83 = arith.constant 3.200000e+01 : f32
    %215 = vector.broadcast %cst_83 : f32 to vector<8x1xf32>
    %216 = arith.divf %214, %215 : vector<8x1xf32>
    %217 = vector.broadcast %216 : vector<8x1xf32> to vector<8x32xf32>
    %218 = arith.subf %212, %217 : vector<8x32xf32>
    %219 = arith.mulf %218, %218 : vector<8x32xf32>
    %cst_84 = arith.constant dense<0.000000e+00> : vector<8xf32>
    %220 = vector.multi_reduction <add>, %219, %cst_84 [1] : vector<8x32xf32> to vector<8xf32>
    %221 = vector.shape_cast %220 : vector<8xf32> to vector<8x1xf32>
    %cst_85 = arith.constant 3.200000e+01 : f32
    %222 = vector.broadcast %cst_85 : f32 to vector<8x1xf32>
    %223 = arith.divf %221, %222 : vector<8x1xf32>
    %224 = vector.broadcast %216 : vector<8x1xf32> to vector<8x32xf32>
    %225 = arith.subf %212, %224 : vector<8x32xf32>
    %cst_86 = arith.constant 9.99999974E-6 : f32
    %226 = vector.broadcast %cst_86 : f32 to vector<8x1xf32>
    %227 = arith.addf %223, %226 : vector<8x1xf32>
    %228 = math.rsqrt %227 : vector<8x1xf32>
    %229 = vector.broadcast %228 : vector<8x1xf32> to vector<8x32xf32>
    %230 = arith.mulf %225, %229 : vector<8x32xf32>
    %231 = vector.extract_strided_slice %180 {offsets = [0, 0], sizes = [8, 16], strides = [1, 1]} : vector<16x16xf32> to vector<8x16xf32>
    %c112 = arith.constant 112 : index
    %c0_87 = arith.constant 0 : index
    %232 = vector.load %arg7[%c112, %c0_87] : memref<160x16xf32, #tpu.memory_space<vmem>>, vector<16x16xf32>
    %cst_88 = arith.constant dense<0.000000e+00> : vector<8x16xf32>
    %233 = tpu.matmul %231, %232, %cst_88 {dimension_numbers = #tpu.dot_dimension_numbers<[1], [0], [0], [1], [0, 0, 1, 1], [], []>} : vector<8x16xf32>, vector<16x16xf32>, vector<8x16xf32> -> vector<8x16xf32>
    %c128_89 = arith.constant 128 : index
    %c0_90 = arith.constant 0 : index
    %234 = vector.load %arg7[%c128_89, %c0_90] : memref<160x16xf32, #tpu.memory_space<vmem>>, vector<32x16xf32>
    %cst_91 = arith.constant dense<0.000000e+00> : vector<8x16xf32>
    %235 = tpu.matmul %178, %234, %cst_91 {dimension_numbers = #tpu.dot_dimension_numbers<[1], [0], [0], [1], [0, 0, 1, 1], [], []>} : vector<8x32xf32>, vector<32x16xf32>, vector<8x16xf32> -> vector<8x16xf32>
    %236 = arith.addf %233, %235 : vector<8x16xf32>
    %c13 = arith.constant 13 : index
    %c0_92 = arith.constant 0 : index
    %237 = vector.load %arg5[%c13, %c0_92] : memref<18x64xf32, #tpu.memory_space<vmem>>, vector<1x16xf32>
    %238 = vector.broadcast %237 : vector<1x16xf32> to vector<8x16xf32>
    %239 = arith.addf %236, %238 : vector<8x16xf32>
    %cst_93 = arith.constant dense<0.000000e+00> : vector<8xf32>
    %240 = vector.multi_reduction <add>, %239, %cst_93 [1] : vector<8x16xf32> to vector<8xf32>
    %241 = vector.shape_cast %240 : vector<8xf32> to vector<8x1xf32>
    %cst_94 = arith.constant 1.600000e+01 : f32
    %242 = vector.broadcast %cst_94 : f32 to vector<8x1xf32>
    %243 = arith.divf %241, %242 : vector<8x1xf32>
    %244 = vector.broadcast %243 : vector<8x1xf32> to vector<8x16xf32>
    %245 = arith.subf %239, %244 : vector<8x16xf32>
    %246 = arith.mulf %245, %245 : vector<8x16xf32>
    %cst_95 = arith.constant dense<0.000000e+00> : vector<8xf32>
    %247 = vector.multi_reduction <add>, %246, %cst_95 [1] : vector<8x16xf32> to vector<8xf32>
    %248 = vector.shape_cast %247 : vector<8xf32> to vector<8x1xf32>
    %cst_96 = arith.constant 1.600000e+01 : f32
    %249 = vector.broadcast %cst_96 : f32 to vector<8x1xf32>
    %250 = arith.divf %248, %249 : vector<8x1xf32>
    %251 = vector.broadcast %243 : vector<8x1xf32> to vector<8x16xf32>
    %252 = arith.subf %239, %251 : vector<8x16xf32>
    %cst_97 = arith.constant 9.99999974E-6 : f32
    %253 = vector.broadcast %cst_97 : f32 to vector<8x1xf32>
    %254 = arith.addf %250, %253 : vector<8x1xf32>
    %255 = math.rsqrt %254 : vector<8x1xf32>
    %256 = vector.broadcast %255 : vector<8x1xf32> to vector<8x16xf32>
    %257 = arith.mulf %252, %256 : vector<8x16xf32>
    %c0_98 = arith.constant 0 : index
    %c0_99 = arith.constant 0 : index
    %c0_100 = arith.constant 0 : index
    %258 = vector.load %arg4[%c0_98, %c0_99, %c0_100] : memref<4x8x64xf32, #tpu.memory_space<vmem>>, vector<1x8x64xf32>
    %259 = vector.shape_cast %258 : vector<1x8x64xf32> to vector<8x64xf32>
    %c384 = arith.constant 384 : index
    %c0_101 = arith.constant 0 : index
    %260 = vector.load %arg6[%c384, %c0_101] : memref<680x32xf32, #tpu.memory_space<vmem>>, vector<64x32xf32>
    %cst_102 = arith.constant dense<0.000000e+00> : vector<8x32xf32>
    %261 = tpu.matmul %259, %260, %cst_102 {dimension_numbers = #tpu.dot_dimension_numbers<[1], [0], [0], [1], [0, 0, 1, 1], [], []>} : vector<8x64xf32>, vector<64x32xf32>, vector<8x32xf32> -> vector<8x32xf32>
    %c14 = arith.constant 14 : index
    %c0_103 = arith.constant 0 : index
    %262 = vector.load %arg5[%c14, %c0_103] : memref<18x64xf32, #tpu.memory_space<vmem>>, vector<1x32xf32>
    %263 = vector.broadcast %262 : vector<1x32xf32> to vector<8x32xf32>
    %264 = arith.addf %261, %263 : vector<8x32xf32>
    %cst_104 = arith.constant dense<0.000000e+00> : vector<8xf32>
    %265 = vector.multi_reduction <add>, %264, %cst_104 [1] : vector<8x32xf32> to vector<8xf32>
    %266 = vector.shape_cast %265 : vector<8xf32> to vector<8x1xf32>
    %cst_105 = arith.constant 3.200000e+01 : f32
    %267 = vector.broadcast %cst_105 : f32 to vector<8x1xf32>
    %268 = arith.divf %266, %267 : vector<8x1xf32>
    %269 = vector.broadcast %268 : vector<8x1xf32> to vector<8x32xf32>
    %270 = arith.subf %264, %269 : vector<8x32xf32>
    %271 = arith.mulf %270, %270 : vector<8x32xf32>
    %cst_106 = arith.constant dense<0.000000e+00> : vector<8xf32>
    %272 = vector.multi_reduction <add>, %271, %cst_106 [1] : vector<8x32xf32> to vector<8xf32>
    %273 = vector.shape_cast %272 : vector<8xf32> to vector<8x1xf32>
    %cst_107 = arith.constant 3.200000e+01 : f32
    %274 = vector.broadcast %cst_107 : f32 to vector<8x1xf32>
    %275 = arith.divf %273, %274 : vector<8x1xf32>
    %276 = vector.broadcast %268 : vector<8x1xf32> to vector<8x32xf32>
    %277 = arith.subf %264, %276 : vector<8x32xf32>
    %cst_108 = arith.constant 9.99999974E-6 : f32
    %278 = vector.broadcast %cst_108 : f32 to vector<8x1xf32>
    %279 = arith.addf %275, %278 : vector<8x1xf32>
    %280 = math.rsqrt %279 : vector<8x1xf32>
    %281 = vector.broadcast %280 : vector<8x1xf32> to vector<8x32xf32>
    %282 = arith.mulf %277, %281 : vector<8x32xf32>
    %c1_109 = arith.constant 1 : index
    %c0_110 = arith.constant 0 : index
    %c0_111 = arith.constant 0 : index
    %283 = vector.load %arg4[%c1_109, %c0_110, %c0_111] : memref<4x8x64xf32, #tpu.memory_space<vmem>>, vector<1x8x64xf32>
    %284 = vector.shape_cast %283 : vector<1x8x64xf32> to vector<8x64xf32>
    %c448 = arith.constant 448 : index
    %c0_112 = arith.constant 0 : index
    %285 = vector.load %arg6[%c448, %c0_112] : memref<680x32xf32, #tpu.memory_space<vmem>>, vector<64x32xf32>
    %cst_113 = arith.constant dense<0.000000e+00> : vector<8x32xf32>
    %286 = tpu.matmul %284, %285, %cst_113 {dimension_numbers = #tpu.dot_dimension_numbers<[1], [0], [0], [1], [0, 0, 1, 1], [], []>} : vector<8x64xf32>, vector<64x32xf32>, vector<8x32xf32> -> vector<8x32xf32>
    %c15 = arith.constant 15 : index
    %c0_114 = arith.constant 0 : index
    %287 = vector.load %arg5[%c15, %c0_114] : memref<18x64xf32, #tpu.memory_space<vmem>>, vector<1x32xf32>
    %288 = vector.broadcast %287 : vector<1x32xf32> to vector<8x32xf32>
    %289 = arith.addf %286, %288 : vector<8x32xf32>
    %cst_115 = arith.constant dense<0.000000e+00> : vector<8xf32>
    %290 = vector.multi_reduction <add>, %289, %cst_115 [1] : vector<8x32xf32> to vector<8xf32>
    %291 = vector.shape_cast %290 : vector<8xf32> to vector<8x1xf32>
    %cst_116 = arith.constant 3.200000e+01 : f32
    %292 = vector.broadcast %cst_116 : f32 to vector<8x1xf32>
    %293 = arith.divf %291, %292 : vector<8x1xf32>
    %294 = vector.broadcast %293 : vector<8x1xf32> to vector<8x32xf32>
    %295 = arith.subf %289, %294 : vector<8x32xf32>
    %296 = arith.mulf %295, %295 : vector<8x32xf32>
    %cst_117 = arith.constant dense<0.000000e+00> : vector<8xf32>
    %297 = vector.multi_reduction <add>, %296, %cst_117 [1] : vector<8x32xf32> to vector<8xf32>
    %298 = vector.shape_cast %297 : vector<8xf32> to vector<8x1xf32>
    %cst_118 = arith.constant 3.200000e+01 : f32
    %299 = vector.broadcast %cst_118 : f32 to vector<8x1xf32>
    %300 = arith.divf %298, %299 : vector<8x1xf32>
    %301 = vector.broadcast %293 : vector<8x1xf32> to vector<8x32xf32>
    %302 = arith.subf %289, %301 : vector<8x32xf32>
    %cst_119 = arith.constant 9.99999974E-6 : f32
    %303 = vector.broadcast %cst_119 : f32 to vector<8x1xf32>
    %304 = arith.addf %300, %303 : vector<8x1xf32>
    %305 = math.rsqrt %304 : vector<8x1xf32>
    %306 = vector.broadcast %305 : vector<8x1xf32> to vector<8x32xf32>
    %307 = arith.mulf %302, %306 : vector<8x32xf32>
    %c2_120 = arith.constant 2 : index
    %c0_121 = arith.constant 0 : index
    %c0_122 = arith.constant 0 : index
    %308 = vector.load %arg4[%c2_120, %c0_121, %c0_122] : memref<4x8x64xf32, #tpu.memory_space<vmem>>, vector<1x8x64xf32>
    %309 = vector.shape_cast %308 : vector<1x8x64xf32> to vector<8x64xf32>
    %c512 = arith.constant 512 : index
    %c0_123 = arith.constant 0 : index
    %310 = vector.load %arg6[%c512, %c0_123] : memref<680x32xf32, #tpu.memory_space<vmem>>, vector<64x32xf32>
    %cst_124 = arith.constant dense<0.000000e+00> : vector<8x32xf32>
    %311 = tpu.matmul %309, %310, %cst_124 {dimension_numbers = #tpu.dot_dimension_numbers<[1], [0], [0], [1], [0, 0, 1, 1], [], []>} : vector<8x64xf32>, vector<64x32xf32>, vector<8x32xf32> -> vector<8x32xf32>
    %c16_125 = arith.constant 16 : index
    %c0_126 = arith.constant 0 : index
    %312 = vector.load %arg5[%c16_125, %c0_126] : memref<18x64xf32, #tpu.memory_space<vmem>>, vector<1x32xf32>
    %313 = vector.broadcast %312 : vector<1x32xf32> to vector<8x32xf32>
    %314 = arith.addf %311, %313 : vector<8x32xf32>
    %cst_127 = arith.constant dense<0.000000e+00> : vector<8xf32>
    %315 = vector.multi_reduction <add>, %314, %cst_127 [1] : vector<8x32xf32> to vector<8xf32>
    %316 = vector.shape_cast %315 : vector<8xf32> to vector<8x1xf32>
    %cst_128 = arith.constant 3.200000e+01 : f32
    %317 = vector.broadcast %cst_128 : f32 to vector<8x1xf32>
    %318 = arith.divf %316, %317 : vector<8x1xf32>
    %319 = vector.broadcast %318 : vector<8x1xf32> to vector<8x32xf32>
    %320 = arith.subf %314, %319 : vector<8x32xf32>
    %321 = arith.mulf %320, %320 : vector<8x32xf32>
    %cst_129 = arith.constant dense<0.000000e+00> : vector<8xf32>
    %322 = vector.multi_reduction <add>, %321, %cst_129 [1] : vector<8x32xf32> to vector<8xf32>
    %323 = vector.shape_cast %322 : vector<8xf32> to vector<8x1xf32>
    %cst_130 = arith.constant 3.200000e+01 : f32
    %324 = vector.broadcast %cst_130 : f32 to vector<8x1xf32>
    %325 = arith.divf %323, %324 : vector<8x1xf32>
    %326 = vector.broadcast %318 : vector<8x1xf32> to vector<8x32xf32>
    %327 = arith.subf %314, %326 : vector<8x32xf32>
    %cst_131 = arith.constant 9.99999974E-6 : f32
    %328 = vector.broadcast %cst_131 : f32 to vector<8x1xf32>
    %329 = arith.addf %325, %328 : vector<8x1xf32>
    %330 = math.rsqrt %329 : vector<8x1xf32>
    %331 = vector.broadcast %330 : vector<8x1xf32> to vector<8x32xf32>
    %332 = arith.mulf %327, %331 : vector<8x32xf32>
    %c3_132 = arith.constant 3 : index
    %c0_133 = arith.constant 0 : index
    %c0_134 = arith.constant 0 : index
    %333 = vector.load %arg4[%c3_132, %c0_133, %c0_134] : memref<4x8x64xf32, #tpu.memory_space<vmem>>, vector<1x8x64xf32>
    %334 = vector.shape_cast %333 : vector<1x8x64xf32> to vector<8x64xf32>
    %c576 = arith.constant 576 : index
    %c0_135 = arith.constant 0 : index
    %335 = vector.load %arg6[%c576, %c0_135] : memref<680x32xf32, #tpu.memory_space<vmem>>, vector<64x32xf32>
    %cst_136 = arith.constant dense<0.000000e+00> : vector<8x32xf32>
    %336 = tpu.matmul %334, %335, %cst_136 {dimension_numbers = #tpu.dot_dimension_numbers<[1], [0], [0], [1], [0, 0, 1, 1], [], []>} : vector<8x64xf32>, vector<64x32xf32>, vector<8x32xf32> -> vector<8x32xf32>
    %c17 = arith.constant 17 : index
    %c0_137 = arith.constant 0 : index
    %337 = vector.load %arg5[%c17, %c0_137] : memref<18x64xf32, #tpu.memory_space<vmem>>, vector<1x32xf32>
    %338 = vector.broadcast %337 : vector<1x32xf32> to vector<8x32xf32>
    %339 = arith.addf %336, %338 : vector<8x32xf32>
    %cst_138 = arith.constant dense<0.000000e+00> : vector<8xf32>
    %340 = vector.multi_reduction <add>, %339, %cst_138 [1] : vector<8x32xf32> to vector<8xf32>
    %341 = vector.shape_cast %340 : vector<8xf32> to vector<8x1xf32>
    %cst_139 = arith.constant 3.200000e+01 : f32
    %342 = vector.broadcast %cst_139 : f32 to vector<8x1xf32>
    %343 = arith.divf %341, %342 : vector<8x1xf32>
    %344 = vector.broadcast %343 : vector<8x1xf32> to vector<8x32xf32>
    %345 = arith.subf %339, %344 : vector<8x32xf32>
    %346 = arith.mulf %345, %345 : vector<8x32xf32>
    %cst_140 = arith.constant dense<0.000000e+00> : vector<8xf32>
    %347 = vector.multi_reduction <add>, %346, %cst_140 [1] : vector<8x32xf32> to vector<8xf32>
    %348 = vector.shape_cast %347 : vector<8xf32> to vector<8x1xf32>
    %cst_141 = arith.constant 3.200000e+01 : f32
    %349 = vector.broadcast %cst_141 : f32 to vector<8x1xf32>
    %350 = arith.divf %348, %349 : vector<8x1xf32>
    %351 = vector.broadcast %343 : vector<8x1xf32> to vector<8x32xf32>
    %352 = arith.subf %339, %351 : vector<8x32xf32>
    %cst_142 = arith.constant 9.99999974E-6 : f32
    %353 = vector.broadcast %cst_142 : f32 to vector<8x1xf32>
    %354 = arith.addf %350, %353 : vector<8x1xf32>
    %355 = math.rsqrt %354 : vector<8x1xf32>
    %356 = vector.broadcast %355 : vector<8x1xf32> to vector<8x32xf32>
    %357 = arith.mulf %352, %356 : vector<8x32xf32>
    %c0_143 = arith.constant 0 : index
    %c0_144 = arith.constant 0 : index
    %358 = vector.load %arg9[%c0_143, %c0_144] : memref<8x1408xf32, #tpu.memory_space<vmem>>, vector<8x32xf32>
    tpu.vector_store %arg9[%c0_143, %c0_144], %178 {strides = array<i32>} : memref<8x1408xf32, #tpu.memory_space<vmem>>, vector<8x32xf32>,
    %c0_145 = arith.constant 0 : index
    %c128_146 = arith.constant 128 : index
    %359 = vector.load %arg9[%c0_145, %c128_146] : memref<8x1408xf32, #tpu.memory_space<vmem>>, vector<8x16xf32>
    tpu.vector_store %arg9[%c0_145, %c128_146], %30 {strides = array<i32>} : memref<8x1408xf32, #tpu.memory_space<vmem>>, vector<8x16xf32>,
    %c0_147 = arith.constant 0 : index
    %c256_148 = arith.constant 256 : index
    %360 = vector.load %arg9[%c0_147, %c256_148] : memref<8x1408xf32, #tpu.memory_space<vmem>>, vector<8x16xf32>
    tpu.vector_store %arg9[%c0_147, %c256_148], %189 {strides = array<i32>} : memref<8x1408xf32, #tpu.memory_space<vmem>>, vector<8x16xf32>,
    %c0_149 = arith.constant 0 : index
    %c384_150 = arith.constant 384 : index
    %361 = vector.load %arg9[%c0_149, %c384_150] : memref<8x1408xf32, #tpu.memory_space<vmem>>, vector<8x16xf32>
    tpu.vector_store %arg9[%c0_149, %c384_150], %31 {strides = array<i32>} : memref<8x1408xf32, #tpu.memory_space<vmem>>, vector<8x16xf32>,
    %c0_151 = arith.constant 0 : index
    %c512_152 = arith.constant 512 : index
    %362 = vector.load %arg9[%c0_151, %c512_152] : memref<8x1408xf32, #tpu.memory_space<vmem>>, vector<8x16xf32>
    tpu.vector_store %arg9[%c0_151, %c512_152], %190 {strides = array<i32>} : memref<8x1408xf32, #tpu.memory_space<vmem>>, vector<8x16xf32>,
    %c0_153 = arith.constant 0 : index
    %c640_154 = arith.constant 640 : index
    %363 = vector.load %arg9[%c0_153, %c640_154] : memref<8x1408xf32, #tpu.memory_space<vmem>>, vector<8x32xf32>
    tpu.vector_store %arg9[%c0_153, %c640_154], %230 {strides = array<i32>} : memref<8x1408xf32, #tpu.memory_space<vmem>>, vector<8x32xf32>,
    %c0_155 = arith.constant 0 : index
    %c768 = arith.constant 768 : index
    %364 = vector.load %arg9[%c0_155, %c768] : memref<8x1408xf32, #tpu.memory_space<vmem>>, vector<8x16xf32>
    tpu.vector_store %arg9[%c0_155, %c768], %257 {strides = array<i32>} : memref<8x1408xf32, #tpu.memory_space<vmem>>, vector<8x16xf32>,
    %c0_156 = arith.constant 0 : index
    %c896 = arith.constant 896 : index
    %365 = vector.load %arg9[%c0_156, %c896] : memref<8x1408xf32, #tpu.memory_space<vmem>>, vector<8x32xf32>
    tpu.vector_store %arg9[%c0_156, %c896], %282 {strides = array<i32>} : memref<8x1408xf32, #tpu.memory_space<vmem>>, vector<8x32xf32>,
    %c0_157 = arith.constant 0 : index
    %c1024 = arith.constant 1024 : index
    %366 = vector.load %arg9[%c0_157, %c1024] : memref<8x1408xf32, #tpu.memory_space<vmem>>, vector<8x32xf32>
    tpu.vector_store %arg9[%c0_157, %c1024], %307 {strides = array<i32>} : memref<8x1408xf32, #tpu.memory_space<vmem>>, vector<8x32xf32>,
    %c0_158 = arith.constant 0 : index
    %c1152 = arith.constant 1152 : index
    %367 = vector.load %arg9[%c0_158, %c1152] : memref<8x1408xf32, #tpu.memory_space<vmem>>, vector<8x32xf32>
    tpu.vector_store %arg9[%c0_158, %c1152], %332 {strides = array<i32>} : memref<8x1408xf32, #tpu.memory_space<vmem>>, vector<8x32xf32>,
    %c0_159 = arith.constant 0 : index
    %c1280 = arith.constant 1280 : index
    %368 = vector.load %arg9[%c0_159, %c1280] : memref<8x1408xf32, #tpu.memory_space<vmem>>, vector<8x32xf32>
    tpu.vector_store %arg9[%c0_159, %c1280], %357 {strides = array<i32>} : memref<8x1408xf32, #tpu.memory_space<vmem>>, vector<8x32xf32>,
    return
  }
  func.func @transform_0(%arg0: i32) -> (i32, i32, i32) {
    %c0_i32 = arith.constant 0 : i32
    %c0_i32_0 = arith.constant 0 : i32
    %c0_i32_1 = arith.constant 0 : i32
    return %c0_i32, %arg0, %c0_i32_0 : i32, i32, i32
  }
  func.func @transform_1(%arg0: i32) -> (i32, i32, i32) {
    %c0_i32 = arith.constant 0 : i32
    %c0_i32_0 = arith.constant 0 : i32
    %c0_i32_1 = arith.constant 0 : i32
    return %c0_i32, %arg0, %c0_i32_0 : i32, i32, i32
  }
  func.func @transform_2(%arg0: i32) -> (i32, i32, i32) {
    %c0_i32 = arith.constant 0 : i32
    %c0_i32_0 = arith.constant 0 : i32
    %c0_i32_1 = arith.constant 0 : i32
    return %c0_i32, %arg0, %c0_i32_0 : i32, i32, i32
  }
  func.func @transform_3(%arg0: i32) -> (i32, i32, i32) {
    %c0_i32 = arith.constant 0 : i32
    %c0_i32_0 = arith.constant 0 : i32
    %c0_i32_1 = arith.constant 0 : i32
    return %c0_i32, %arg0, %c0_i32_0 : i32, i32, i32
  }
  func.func @transform_4(%arg0: i32) -> (i32, i32) {
    %c0_i32 = arith.constant 0 : i32
    %c0_i32_0 = arith.constant 0 : i32
    %c0_i32_1 = arith.constant 0 : i32
    return %c0_i32, %c0_i32_0 : i32, i32
  }
  func.func @transform_5(%arg0: i32) -> (i32, i32) {
    %c0_i32 = arith.constant 0 : i32
    %c0_i32_0 = arith.constant 0 : i32
    %c0_i32_1 = arith.constant 0 : i32
    return %c0_i32, %c0_i32_0 : i32, i32
  }
  func.func @transform_6(%arg0: i32) -> (i32, i32) {
    %c0_i32 = arith.constant 0 : i32
    %c0_i32_0 = arith.constant 0 : i32
    %c0_i32_1 = arith.constant 0 : i32
    return %c0_i32, %c0_i32_0 : i32, i32
  }
  func.func @transform_7(%arg0: i32) -> (i32, i32) {
    %c0_i32 = arith.constant 0 : i32
    %c0_i32_0 = arith.constant 0 : i32
    %c0_i32_1 = arith.constant 0 : i32
    return %c0_i32, %c0_i32_0 : i32, i32
  }
  func.func @transform_8(%arg0: i32) -> (i32, i32) {
    %c0_i32 = arith.constant 0 : i32
    %c0_i32_0 = arith.constant 0 : i32
    return %arg0, %c0_i32 : i32, i32
  }
}

</mosaic_0001>

<bundles_post_ra>
// kernel: forward.1
= control target key start
LH: loop header
LB: loop body
LE: loop exit
PB: predicated region body
PF: predicated region fallthrough
CT: control target
= control target key end

     0   :  { %v1434_v0 = vmov 0   ;;  %vm134_vm0 = vcmask 261120   ;;  %v1435_v11 = vmov 32.0   ;;  %vm330_vm5 = vcmask 64512   ;;  %s1436_s16 = smov 96   ;;  %s1437_s25 = smov 112   ;;  %s2195_s0 = inlined_call_operand.vmem [shape: f32[4,8,32], index: 0, kind: input, shape index: {}]   ;;  %s2196_s4 = inlined_call_operand.vmem [shape: f32[18,64], index: 4, kind: input, shape index: {}]   ;;  %s2197_s5 = inlined_call_operand.vmem [shape: f32[680,32], index: 5, kind: input, shape index: {}]   ;;  %s2198_s7 = inlined_call_operand.vmem [shape: f32[8,64], index: 7, kind: input, shape index: {}]   ;;  %s2199_s1 = inlined_call_operand.vmem [shape: f32[4,8,8], index: 1, kind: input, shape index: {}]   ;;  %s2200_s6 = inlined_call_operand.vmem [shape: f32[160,16], index: 6, kind: input, shape index: {}]   ;;  %s2201_s2 = inlined_call_operand.vmem [shape: f32[2,8,64], index: 2, kind: input, shape index: {}]   ;;  %s2202_s8 = inlined_call_operand.vmem [shape: f32[8,1408], index: 8, kind: output, shape index: {}]   ;;  %s2203_s3 = inlined_call_operand.vmem [shape: f32[4,8,64], index: 3, kind: input, shape index: {}]  }
   0x1   :  { %1383 = vset.pattern.permute.xlu0 %v1434_v0  ;;  %v1323_v1 = vld [vmem:[%s2195_s0 + $0x18] sm:$0xff]  ;;  %v1384_v2 = vld [vmem:[%s2196_s4] ss:$0 sm:$0xff]  ;;  %v130_v10 = vld [vmem:[%s2197_s5 + $0x10] sm:$0xff]  ;;  %1402 = vrcp.f32 %v1435_v11  ;;  %vm46_vm6 = vcmask 523264   ;;  %vm76_vm7 = vcmask 130048  }
   0x2   :  { %176 = vperm.xlu0 %1383, %v1323_v1   ;;  %v29_v5 = vld [vmem:[%s2195_s0] sm:$0xff]  ;;  %v131_v9 = vld [vmem:[%s2197_s5 + $0x18] sm:$0xff]  ;;  %v129_v12 = vld [vmem:[%s2197_s5 + $0x8] sm:$0xff]  ;;  %vm475_vm9 = vcmask 1041408   ;;  %vm462_vm14 = vcmask 15360  }
   0x3   :  { %156 = vmatpush.msra.mxu1 %v131_v9  ;;  %v128_v13 = vld [vmem:[%s2197_s5] sm:$0xff]  ;;  %v219_v25 = vld [vmem:[%s2197_s5 + $0x58] sm:$0xff]  ;;  %v218_v28 = vld [vmem:[%s2197_s5 + $0x50] sm:$0xff] }
   0x4   :  { %v215_v26 = vld [vmem:[%s2197_s5 + $0x38] sm:$0xff]  ;;  %235 = vmatpush.msra.mxu2 %v219_v25  ;;  %v1530_v27 = vld [vmem:[%s2196_s4 + $0x4] ss:$0 sm:$0xff]  ;;  %v214_v29 = vld [vmem:[%s2197_s5 + $0x30] sm:$0xff] }
   0x5   :  { %157 = vmatpush.msra.mxu1 %v130_v10  ;;  %255 = vmatpush.msra.mxu3 %v215_v26  ;;  %v217_v32 = vld [vmem:[%s2197_s5 + $0x48] sm:$0xff]  ;;  %v216_v35 = vld [vmem:[%s2197_s5 + $0x40] sm:$0xff]  ;;  %v266_v37 = vld [vmem:[%s2197_s5 + $0x78] sm:$0xff] }
   0x6   :  { %236 = vmatpush.msra.mxu2 %v218_v28  ;;  %v213_v33 = vld [vmem:[%s2197_s5 + $0x28] sm:$0xff]  ;;  %v212_v36 = vld [vmem:[%s2197_s5 + $0x20] sm:$0xff]  ;;  %v265_v38 = vld [vmem:[%s2197_s5 + $0x70] sm:$0xff] }
   0x7   :  { %158 = vmatpush.msra.mxu1 %v129_v12  ;;  %v1403_v14 = vpop.eup %1402  ;;  %256 = vmatpush.msra.mxu3 %v214_v29  ;;  %v264_v39 = vld [vmem:[%s2197_s5 + $0x68] sm:$0xff]  ;;  %v263_v40 = vld [vmem:[%s2197_s5 + $0x60] sm:$0xff]  ;;  %v297_v55 = vld [vmem:[%s2197_s5 + $0x98] sm:$0xff] }
   0x8   :  { %v187_v15 = vmul.f32 32.0, %v1403_v14  ;;  %vm191_vm1 = vweird.f32 %v1403_v14  ;;  %237 = vmatpush.msra.mxu2 %v217_v32  ;;  %v327_v41 = vld [vmem:[%s2198_s7] sm:$0xff]  ;;  %v324_v54 = vld [vmem:[%s2199_s1 + $0x8] sm:$0xff]  ;;  %v325_v56 = vld [vmem:[%s2199_s1 + $0x10] sm:$0xff] }
   0x9   :  { %159 = vmatpush.msra.mxu1 %v128_v13  ;;  %257 = vmatpush.msra.mxu3 %v213_v33  ;;  %v323_v53 = vld [vmem:[%s2199_s1] sm:$0xff]  ;;  %v296_v57 = vld [vmem:[%s2197_s5 + $0x90] sm:$0xff]  ;;  %v295_v58 = vld [vmem:[%s2197_s5 + $0x88] sm:$0xff] }
   0xa   :  { %1326 = vmatmul.msk.f32.vlgmr.msra.gmra.mxu1 %vm134_vm0, %v29_v5  ;;  %v188_v16 = vsub.f32 1.0, %v187_v15  ;;  %238 = vmatpush.msra.mxu2 %v216_v35  ;;  %v294_v59 = vld [vmem:[%s2197_s5 + $0x80] sm:$0xff]  ;;  %v326_v60 = vld [vmem:[%s2199_s1 + $0x18] sm:$0xff]  ;;  %v42_v62 = vld [vmem:[%s2200_s6 + $0x30] sm:$0xff] }
   0xb   :  { %258 = vmatpush.msra.mxu3 %v212_v36  ;;  %v43_v61 = vld [vmem:[%s2200_s6 + $0x38] sm:$0xff]  ;;  %v41_v63 = vld [vmem:[%s2200_s6 + $0x28] sm:$0xff]  ;;  %v40_v1 = vld [vmem:[%s2200_s6 + $0x20] sm:$0xff] }
   0xc   :  { %v189_v17 = vmul.f32 %v1403_v14, %v188_v16  ;;  %1330 = vmatmul.msk.f32.vlgmr.msra.gmra.mxu3 %vm134_vm0, %v29_v5  ;;  %282 = vmatpush.msrb.mxu2 %v266_v37  ;;  %v1388_v11 = vld [vmem:[%s2196_s4 + $0x5] ss:$0 sm:$0xff]  ;;  %v1389_v15 = vld [vmem:[%s2196_s4 + $0x7] ss:$0 sm:$0xff]  ;;  %v373_v26 = vld [vmem:[%s2197_s5 + $0x290] sm:$0xff] }
   0xd   :  { %315 = vmatpush.msrb.mxu3 %v297_v55  ;;  %61 = vmatpush.msra.mxu0 %v43_v61  ;;  %v372_v28 = vld [vmem:[%s2197_s5 + $0x288] sm:$0xff]  ;;  %v1391_v37 = vld [vmem:[%s2196_s4 + $0x3] ss:$0 sm:$0xff] }
   0xe   :  { %v190_v18 = vadd.f32 %v1403_v14, %v189_v17  ;;  %283 = vmatpush.msrb.mxu2 %v265_v38  ;;  %v35_v32 = vld [vmem:[%s2201_s2 + $0x8] sm:$0xff] }
   0xf   :  { %316 = vmatpush.msrb.mxu3 %v296_v57  ;;  %62 = vmatpush.msra.mxu0 %v42_v62  ;;  %v376_v62 = vld [vmem:[%s2197_s5 + $0x280] sm:$0x3] }
  0x10   :  { %v1517_v19 = vsel %vm191_vm1, %v1403_v14, %v190_v18  ;;  %284 = vmatpush.msrb.mxu2 %v264_v39 }
  0x11   :  { %317 = vmatpush.msrb.mxu3 %v295_v58  ;;  %63 = vmatpush.msra.mxu0 %v41_v63 }
  0x12   :  { %285 = vmatpush.msrb.mxu2 %v263_v40 }
  0x13   :  { %318 = vmatpush.msrb.mxu3 %v294_v59  ;;  %64 = vmatpush.msra.mxu0 %v40_v1 }
  0x74   :  { %v1497_v3 = vpop.permute.xlu0 %176 }
  0x75   :  { %v180_v4 = vmul.f32 %v1384_v2, %v1497_v3  ;;  %v39_v2 = vld [vmem:[%s2200_s6 + $0x18] sm:$0xff] }
  0x76   :  { %65 = vmatpush.msra.mxu0 %v39_v2 }
  0x77   :  { %v181_v6 = vadd.f32 1.0, %v180_v4  ;;  %v38_v4 = vld [vmem:[%s2200_s6 + $0x10] sm:$0xff] }
  0x78   :  { %66 = vmatpush.msra.mxu0 %v38_v4 }
  0x79   :  { %v182_v7 = vmul.f32 %v181_v6, %v29_v5  ;;  %v37_v5 = vld [vmem:[%s2200_s6 + $0x8] sm:$0xff]  ;;  %v36_v6 = vld [vmem:[%s2200_s6] sm:$0xff] }
  0x7a   :  { %67 = vmatpush.msra.mxu0 %v37_v5 }
  0x7b   :  { %v183_v8 = vsel %vm134_vm0, %v182_v7, 0.0 }
  0x7c   :  { %184 = vadd.xlane.f32.xlu0 %v183_v8  ;;  %68 = vmatpush.msra.mxu0 %v36_v6 }
  0x7e   :  { %1341 = vmatpush.msk.msrb.mxu0 %vm475_vm9, %v376_v62 }
  0x87   :  { %v161_v30 = vpop.f32.mrf.mxu1 }
  0x88   :  { %v162_v31 = vadd.f32 %v1530_v27, %v161_v30  ;;  %v1350_v30 = vld [vmem:[%s2195_s0 + $0x8] sm:$0xff] }
  0x89   :  { %1327 = vmatmul.msk.f32.gmra.mxu1 %vm134_vm0, %v1350_v30 }
  0x8a   :  { %v170_v34 = vmax.f32 %v162_v31, 0.0  ;;  %v1390_v31 = vld [vmem:[%s2196_s4 + $0x6] ss:$0 sm:$0xff] }
  0x8c   :  { %1329 = vmatmul.msk.f32.vlgmr.msra.gmra.mxu2 %vm134_vm0, %v170_v34 }
  0x8d   :  { %358 = vmatpush.msra.mxu2 %v327_v41 }
  0x8f   :  { %v260_v9 = vpop.f32.mrf.mxu3 }
  0xef   :  { %v185_v20 = vpop.xlane.xlu0 %184 }
  0xf0   :  { %v193_v21 = vmul.f32 %v1517_v19, %v185_v20 }
  0xf2   :  { %v194_v22 = vsub.f32 %v182_v7, %v193_v21  ;;  %v34_v7 = vld [vmem:[%s2201_s2] sm:$0xff] }
  0xf3   :  { %1324 = vmatmul.msk.f32.vlgmr.msra.gmra.mxu0 %vm46_vm6, %v34_v7  ;;  %v375_v21 = vld [vmem:[%s2197_s5 + $0x2a0] sm:$0xff] }
  0xf4   :  { %v195_v23 = vmul.f32 %v194_v22, %v194_v22  ;;  %405 = vmatpush.msra.mxu3 %v375_v21 }
  0xf6   :  { %v196_v24 = vsel %vm134_vm0, %v195_v23, 0.0 }
  0xf7   :  { %197 = vadd.xlane.f32.xlu1 %v196_v24 }
  0xfb   :  { %1325 = vmatmul.msk.f32.gmra.mxu0 %vm46_vm6, %v35_v32 }
 0x10f   :  { %v240_v8 = vpop.f32.mrf.mxu2 }
 0x110   :  { %v261_v10 = vadd.f32 %v260_v9, %v240_v8 }
 0x16a   :  { %v198_v42 = vpop.xlane.xlu1 %197 }
 0x16b   :  { %v199_v43 = vmul.f32 %v198_v42, %v1517_v19 }
 0x16d   :  { %v200_v44 = vadd.f32 1e-05, %v199_v43 }
 0x16f   :  { %1404 = vrsqrt.f32 %v200_v44  ;;  %vm207_vm3 = vweird.f32 %v200_v44 }
 0x170   :  { %v70_v38 = vpop.f32.mrf.mxu0 }
 0x171   :  { %v71_v39 = vadd.f32 %v1391_v37, %v70_v38 }
 0x173   :  { %v77_v41 = vsel %vm76_vm7, %v71_v39, 0.0 }
 0x175   :  { %v1405_v45 = vpop.eup %1404 }
 0x176   :  { %v202_v46 = vmul.f32 %v1405_v45, %v200_v44  ;;  %vm208_vm2 = vweird.f32 %v1405_v45 }
 0x177   :  { %vm209_vm4 = vmor %vm207_vm3, %vm208_vm2 }
 0x178   :  { %v203_v47 = vmul.f32 %v1405_v45, %v202_v46  ;;  %v1438_v46 = vmov 16.0  }
 0x179   :  { %1406 = vrcp.f32 %v1438_v46 }
 0x17a   :  { %v204_v48 = vmul.f32 0.5, %v203_v47 }
 0x17c   :  { %v205_v49 = vsub.f32 1.5, %v204_v48  ;;  %v1351_v48 = vld [vmem:[%s2195_s0 + $0x10] sm:$0xff] }
 0x17d   :  { %686 = vrot.lane.b32.xlu0 %v1351_v48, %s1437_s25  ;;  %1328 = vmatmul.msk.f32.gmra.mxu1 %vm134_vm0, %v1351_v48 }
 0x17e   :  { %v206_v50 = vmul.f32 %v1405_v45, %v205_v49 }
 0x17f   :  { %v1407_v47 = vpop.eup %1406 }
 0x180   :  { %v210_v51 = vsel %vm209_vm4, %v1405_v45, %v206_v50  ;;  %v84_v50 = vmul.f32 16.0, %v1407_v47  ;;  %vm88_vm8 = vweird.f32 %v1407_v47 }
 0x181   :  { %v211_v52 = vmul.f32 %v210_v51, %v194_v22  ;;  %v374_v22 = vld [vmem:[%s2197_s5 + $0x298] sm:$0xff] }
 0x182   :  { %406 = vmatpush.msra.mxu3 %v374_v22  ;;  %v85_v51 = vsub.f32 1.0, %v84_v50  ;;  %v884_v50 = vld [vmem:[%s2197_s5 + $0x148] sm:$0xff] }
 0x183   :  { %1331 = vmatmul.msk.f32.vlgmr.msrb.gmra.mxu2 %vm134_vm0, %v211_v52  ;;  %902 = vmatpush.msra.mxu0 %v884_v50 }
 0x184   :  { %407 = vmatpush.msra.mxu3 %v373_v26 }
 0x186   :  { %408 = vmatpush.msra.mxu3 %v372_v28 }
 0x18b   :  { %1333 = vmatmul.msk.f32.vlgmr.msra.gmra.mxu2 %vm330_vm5, %v323_v53  ;;  %v86_v53 = vmul.f32 %v1407_v47, %v85_v51  ;;  %v883_v51 = vld [vmem:[%s2197_s5 + $0x140] sm:$0xff] }
 0x18c   :  { %903 = vmatpush.msra.mxu0 %v883_v51 }
 0x193   :  { %1334 = vmatmul.msk.f32.gmra.mxu2 %vm330_vm5, %v324_v54  ;;  %v87_v54 = vadd.f32 %v1407_v47, %v86_v53 }
 0x195   :  { %v1679_v55 = vsel %vm88_vm8, %v1407_v47, %v87_v54 }
 0x19b   :  { %1335 = vmatmul.msk.f32.gmra.mxu2 %vm330_vm5, %v325_v56 }
 0x1a3   :  { %1336 = vmatmul.msk.f32.gmra.mxu2 %vm330_vm5, %v326_v60 }
 0x206   :  { %v287_v12 = vpop.f32.mrf.mxu2 }
 0x207   :  { %v290_v13 = vadd.f32 %v287_v12, %v261_v10  ;;  %v73_v10 = vpop.f32.mrf.mxu0 }
 0x209   :  { %v1629_v14 = vadd.f32 %v1388_v11, %v290_v13 }
 0x20b   :  { %1332 = vmatmul.msk.f32.vlgmr.msrb.gmra.mxu3 %vm134_vm0, %v1629_v14 }
 0x20e   :  { %v360_v16 = vpop.f32.mrf.mxu2 }
 0x20f   :  { %v361_v17 = vadd.f32 %v1389_v15, %v360_v16 }
 0x211   :  { %509 = vrot.lane.b32.xlu1 %v361_v17, %s1436_s16 }
 0x216   :  { %v363_v18 = vpop.f32.mrf.mxu2 }
 0x217   :  { %v364_v20 = vadd.f32 %v1389_v15, %v363_v18  ;;  %v1690_v18 = vadd.f32 %v1391_v37, %v73_v10 }
 0x219   :  { %514 = vrot.lane.b32.xlu2 %v364_v20, %s1436_s16  ;;  %v80_v22 = vsel %vm76_vm7, %v1690_v18, 0.0 }
 0x21a   :  { %81 = vadd.xlane.f32.xlu0 %v80_v22  ;;  %v648_v22 = vld [vmem:[%s2200_s6 + $0x48] sm:$0xff] }
 0x21b   :  { %706 = vmatpush.msrb.mxu3 %v648_v22  ;;  %v617_v22 = vld [vmem:[%s2197_s5 + $0x110] sm:$0xff] }
 0x21e   :  { %v366_v23 = vpop.f32.mrf.mxu2 }
 0x21f   :  { %v367_v24 = vadd.f32 %v1389_v15, %v366_v23 }
 0x221   :  { %520 = vrot.lane.b32.xlu2 %v367_v24, %s1436_s16 }
 0x226   :  { %v369_v25 = vpop.f32.mrf.mxu2 }
 0x227   :  { %v370_v29 = vadd.f32 %v1389_v15, %v369_v25 }
 0x229   :  { %526 = vrot.lane.b32.xlu2 %v370_v29, %s1436_s16 }
 0x231   :  { %684 = vrot.lane.b32.xlu2 %v1350_v30, %s1437_s25 }
 0x25a   :  { %78 = vadd.xlane.f32.xlu2 %v77_v41 }
 0x273   :  { %v1667_v43 = vpop.permute.xlu2 %514 }
 0x27b   :  { %v1669_v44 = vpop.permute.xlu2 %520 }
 0x283   :  { %v1671_v45 = vpop.permute.xlu2 %526  ;;  %v510_v48 = vpop.permute.xlu1 %509 }
 0x28b   :  { %v1676_v49 = vpop.permute.xlu2 %684 }
 0x28e   :  { %v320_v33 = vpop.f32.mrf.mxu3 }
 0x28f   :  { %v321_v34 = vadd.f32 %v1390_v31, %v320_v33 }
 0x291   :  { %v377_v35 = vmul.f32 %v361_v17, %v321_v34  ;;  %v378_v36 = vmul.f32 %v364_v20, %v321_v34  ;;  %v379_v40 = vmul.f32 %v367_v24, %v321_v34  ;;  %v380_v42 = vmul.f32 %v370_v29, %v321_v34 }
 0x293   :  { %1337 = vmatmul.msk.f32.vlgmr.msra.gmra.mxu3 %vm134_vm0, %v377_v35 }
 0x29b   :  { %1338 = vmatmul.msk.f32.gmra.mxu3 %vm134_vm0, %v378_v36 }
 0x2a3   :  { %1339 = vmatmul.msk.f32.gmra.mxu3 %vm134_vm0, %v379_v40 }
 0x2ab   :  { %1340 = vmatmul.msk.f32.gmra.mxu3 %vm134_vm0, %v380_v42 }
 0x2cd   :  { %v79_v56 = vpop.xlane.xlu2 %78 }
 0x2ce   :  { %v90_v57 = vmul.f32 %v1679_v55, %v79_v56 }
 0x2d0   :  { %v1682_v58 = vsub.f32 %v71_v39, %v90_v57 }
 0x2d2   :  { %v94_v60 = vmul.f32 %v1682_v58, %v1682_v58 }
 0x2d4   :  { %v96_v61 = vsel %vm76_vm7, %v94_v60, 0.0 }
 0x2d5   :  { %97 = vadd.xlane.f32.xlu1 %v96_v61 }
 0x316   :  { %v410_v52 = vpop.f32.mrf.mxu3 }
 0x317   :  { %v422_v2 = vmul.f32 0.25, %v410_v52 }
 0x31e   :  { %v413_v59 = vpop.f32.mrf.mxu3 }
 0x31f   :  { %v423_v1 = vmul.f32 0.25, %v413_v59 }
 0x321   :  { %v426_v5 = vmax.f32 %v422_v2, %v423_v1 }
 0x326   :  { %v416_v63 = vpop.f32.mrf.mxu3 }
 0x327   :  { %v424_v4 = vmul.f32 0.25, %v416_v63 }
 0x329   :  { %v427_v7 = vmax.f32 %v426_v5, %v424_v4  ;;  %v531_v5 = vld [vmem:[%s2197_s5 + $0xa0] sm:$0xff] }
 0x32e   :  { %v419_v6 = vpop.f32.mrf.mxu3 }
 0x32f   :  { %v425_v8 = vmul.f32 0.25, %v419_v6 }
 0x331   :  { %v428_v9 = vmax.f32 %v427_v7, %v425_v8 }
 0x333   :  { %v429_v11 = vsub.f32 %v422_v2, %v428_v9  ;;  %v430_v12 = vsub.f32 %v423_v1, %v428_v9  ;;  %v431_v13 = vsub.f32 %v424_v4, %v428_v9  ;;  %v432_v15 = vsub.f32 %v425_v8, %v428_v9  ;;  %v534_v2 = vld [vmem:[%s2197_s5 + $0xb8] sm:$0xff]  ;;  %v533_v4 = vld [vmem:[%s2197_s5 + $0xb0] sm:$0xff] }
 0x334   :  { %552 = vmatpush.msrb.mxu1 %v534_v2 }
 0x335   :  { %v433_v16 = vmul.f32 1.442695, %v429_v11  ;;  %v435_v17 = vmul.f32 1.442695, %v430_v12  ;;  %v437_v20 = vmul.f32 1.442695, %v431_v13 }
 0x336   :  { %v439_v21 = vmul.f32 1.442695, %v432_v15  ;;  %553 = vmatpush.msrb.mxu1 %v533_v4  ;;  %v618_v4 = vld [vmem:[%s2197_s5 + $0x118] sm:$0xff] }
 0x337   :  { %1408 = vpow2.f32 %v433_v16 }
 0x338   :  { %1410 = vpow2.f32 %v435_v17 }
 0x339   :  { %1412 = vpow2.f32 %v437_v20  ;;  %v652_v20 = vld [vmem:[%s2200_s6 + $0x68] sm:$0xff] }
 0x33a   :  { %1414 = vpow2.f32 %v439_v21  ;;  %v164_v21 = vpop.f32.mrf.mxu1  ;;  %671 = vmatpush.msrb.mxu2 %v652_v20 }
 0x33d   :  { %v1409_v23 = vpop.eup %1408 }
 0x33e   :  { %v1411_v24 = vpop.eup %1410 }
 0x33f   :  { %v441_v25 = vadd.f32 %v1411_v24, %v1409_v23  ;;  %v1413_v26 = vpop.eup %1412 }
 0x340   :  { %v1415_v29 = vpop.eup %1414 }
 0x341   :  { %v442_v28 = vadd.f32 %v1413_v26, %v441_v25  ;;  %v566_v25 = vld [vmem:[%s2197_s5 + $0xf0] sm:$0xff] }
 0x343   :  { %v443_v30 = vadd.f32 %v1415_v29, %v442_v28  ;;  %v649_v28 = vld [vmem:[%s2200_s6 + $0x50] sm:$0xff] }
 0x345   :  { %1416 = vrcp.f32 %v443_v30  ;;  %v455_v34 = vand.u32 2147483648, %v443_v30  ;;  %v453_v36 = vand.u32 2147483647, %v443_v30  ;;  %vm449_vm11 = vweird.f32 %v443_v30 }
 0x347   :  { %v456_v38 = vor.u32 1.1754944e-38, %v455_v34  ;;  %vm454_vm13 = vcmp.eq.f32.partialorder %v453_v36, 8.507059e+37  ;;  %v564_v34 = vld [vmem:[%s2197_s5 + $0xe0] sm:$0xff]  ;;  %v562_v36 = vld [vmem:[%s2197_s5 + $0xd0] sm:$0xff] }
 0x348   :  { %v98_v52 = vpop.xlane.xlu1 %97 }
 0x349   :  { %v102_v53 = vmul.f32 %v98_v52, %v1679_v55 }
 0x34b   :  { %v1417_v31 = vpop.eup %1416  ;;  %v104_v54 = vadd.f32 1e-05, %v102_v53  ;;  %v1386_v53 = vld [vmem:[%s2196_s4 + $0x2] ss:$0 sm:$0xff] }
 0x34c   :  { %v445_v32 = vmul.f32 %v1417_v31, %v443_v30  ;;  %vm450_vm10 = vweird.f32 %v1417_v31  ;;  %v167_v30 = vpop.f32.mrf.mxu1 }
 0x34d   :  { %vm451_vm12 = vmor %vm449_vm11, %vm450_vm10  ;;  %1418 = vrsqrt.f32 %v104_v54  ;;  %vm112_vm15 = vweird.f32 %v104_v54 }
 0x34e   :  { %v446_v33 = vsub.f32 1.0, %v445_v32  ;;  %v687_v32 = vpop.permute.xlu0 %686 }
 0x350   :  { %v447_v35 = vmul.f32 %v1417_v31, %v446_v33 }
 0x352   :  { %v448_v37 = vadd.f32 %v1417_v31, %v447_v35  ;;  %v563_v35 = vld [vmem:[%s2197_s5 + $0xd8] sm:$0xff] }
 0x353   :  { %v1419_v56 = vpop.eup %1418 }
 0x354   :  { %v452_v39 = vsel %vm451_vm12, %v1417_v31, %v448_v37  ;;  %v107_v57 = vmul.f32 %v1419_v56, %v104_v54  ;;  %vm113_vm1 = vweird.f32 %v1419_v56  ;;  %v168_v31 = vadd.f32 %v1530_v27, %v167_v30  ;;  %v560_v37 = vld [vmem:[%s2197_s5 + $0xc0] sm:$0xff] }
 0x355   :  { %v457_v40 = vsel %vm454_vm13, %v456_v38, %v452_v39  ;;  %vm114_vm2 = vmor %vm112_vm15, %vm113_vm1  ;;  %v1011_v38 = vld [vmem:[%s2200_s6 + $0x78] sm:$0xff]  ;;  %v1010_v39 = vld [vmem:[%s2200_s6 + $0x70] sm:$0xff] }
 0x356   :  { %v458_v41 = vmul.f32 %v1409_v23, %v457_v40  ;;  %v459_v42 = vmul.f32 %v1411_v24, %v457_v40  ;;  %v460_v46 = vmul.f32 %v1413_v26, %v457_v40  ;;  %v461_v47 = vmul.f32 %v1415_v29, %v457_v40  ;;  %v650_v23 = vld [vmem:[%s2200_s6 + $0x58] sm:$0xff]  ;;  %v565_v29 = vld [vmem:[%s2197_s5 + $0xe8] sm:$0xff]  ;;  %v615_v30 = vld [vmem:[%s2197_s5 + $0x100] sm:$0xff] }
 0x357   :  { %v108_v59 = vmul.f32 %v1419_v56, %v107_v57  ;;  %v567_v24 = vld [vmem:[%s2197_s5 + $0xf8] sm:$0xff]  ;;  %v172_v33 = vmax.f32 %v168_v31, 0.0  ;;  %v1392_v40 = vld [vmem:[%s2196_s4 + $0x8] ss:$0 sm:$0xff] }
 0x358   :  { %1342 = vmatmul.msk.f32.vlgmr.msrb.gmra.mxu0 %vm462_vm14, %v458_v41 }
 0x359   :  { %v109_v60 = vmul.f32 0.5, %v108_v59 }
 0x35b   :  { %v110_v61 = vsub.f32 1.5, %v109_v60 }
 0x35d   :  { %v111_v62 = vmul.f32 %v1419_v56, %v110_v61 }
 0x35f   :  { %v115_v63 = vsel %vm114_vm2, %v1419_v56, %v111_v62 }
 0x360   :  { %1343 = vmatmul.msk.f32.gmra.mxu0 %vm462_vm14, %v459_v42  ;;  %v126_v1 = vmul.f32 %v115_v63, %v1682_v58  ;;  %v532_v58 = vld [vmem:[%s2197_s5 + $0xa8] sm:$0xff] }
 0x361   :  { %554 = vmatpush.msrb.mxu1 %v532_v58 }
 0x362   :  { %1309 = vst.msk [vmem:[%s2202_s8 + $0x8] sm:$0xff] %vm76_vm7, %v126_v1 }
 0x363   :  { %555 = vmatpush.msrb.mxu1 %v531_v5 }
 0x365   :  { %583 = vmatpush.msra.mxu1 %v567_v24 }
 0x367   :  { %584 = vmatpush.msra.mxu1 %v566_v25 }
 0x368   :  { %1344 = vmatmul.msk.f32.gmra.mxu0 %vm462_vm14, %v460_v46  ;;  %v932_v46 = vld [vmem:[%s2197_s5 + $0x158] sm:$0xff] }
 0x369   :  { %585 = vmatpush.msra.mxu1 %v565_v29  ;;  %950 = vmatpush.msrb.mxu0 %v932_v46  ;;  %v616_v29 = vld [vmem:[%s2197_s5 + $0x108] sm:$0xff]  ;;  %v1086_v46 = vld [vmem:[%s2197_s5 + $0x1a0] sm:$0xff] }
 0x36b   :  { %586 = vmatpush.msra.mxu1 %v564_v34 }
 0x370   :  { %1345 = vmatmul.msk.f32.gmra.mxu0 %vm462_vm14, %v461_v47  ;;  %v931_v47 = vld [vmem:[%s2197_s5 + $0x150] sm:$0xff] }
 0x371   :  { %951 = vmatpush.msrb.mxu0 %v931_v47  ;;  %v1085_v47 = vld [vmem:[%s2197_s5 + $0x198] sm:$0xff] }
 0x378   :  { %1359 = vmatmul.msk.f32.vlgmr.msra.gmra.mxu0 %vm76_vm7, %v126_v1 }
 0x3d5   :  { %v496_v6 = vpop.f32.mrf.mxu0 }
 0x3d6   :  { %v512_v10 = vmul.f32 %v510_v48, %v496_v6  ;;  %v1393_v48 = vld [vmem:[%s2196_s4 + $0xb] ss:$0 sm:$0xff]  ;;  %v1439_v6 = vmov 920167782  }
 0x3dd   :  { %v499_v7 = vpop.f32.mrf.mxu0 }
 0x3de   :  { %v517_v9 = vmul.f32 %v1667_v43, %v499_v7  ;;  %v651_v43 = vld [vmem:[%s2200_s6 + $0x60] sm:$0xff] }
 0x3df   :  { %672 = vmatpush.msrb.mxu2 %v651_v43 }
 0x3e0   :  { %v518_v12 = vadd.f32 %v517_v9, %v512_v10 }
 0x3e1   :  { %673 = vmatpush.msrb.mxu2 %v650_v23 }
 0x3e3   :  { %674 = vmatpush.msrb.mxu2 %v649_v28 }
 0x3e5   :  { %v502_v8 = vpop.f32.mrf.mxu0 }
 0x3e6   :  { %v523_v11 = vmul.f32 %v1669_v44, %v502_v8  ;;  %v165_v44 = vadd.f32 %v1530_v27, %v164_v21  ;;  %v561_v27 = vld [vmem:[%s2197_s5 + $0xc8] sm:$0xff]  ;;  %v1440_v8 = vmov 1326507024  }
 0x3e8   :  { %v524_v15 = vadd.f32 %v523_v11, %v518_v12  ;;  %v171_v26 = vmax.f32 %v165_v44, 0.0  ;;  %v1441_v12 = vmov 2102212464  }
 0x3ea   :  { %1352 = vmatmul.msk.f32.vlgmr.msrb.gmra.mxu2 %vm134_vm0, %v171_v26 }
 0x3ed   :  { %v505_v13 = vpop.f32.mrf.mxu0 }
 0x3ee   :  { %v529_v16 = vmul.f32 %v1671_v45, %v505_v13  ;;  %v647_v45 = vld [vmem:[%s2200_s6 + $0x40] sm:$0xff] }
 0x3ef   :  { %707 = vmatpush.msrb.mxu3 %v647_v45  ;;  %v1444_v45 = vmov 683565275  }
 0x3f0   :  { %v530_v17 = vadd.f32 %v529_v16, %v524_v15  ;;  %1354 = vmatmul.msk.f32.vlgmr.msrb.gmra.mxu3 %vm76_vm7, %v1676_v49  ;;  %v1442_v15 = vmov 2475754826  }
 0x3f1   :  { %1050 = vmatpush.msra.mxu3 %v1011_v38 }
 0x3f2   :  { %1346 = vmatmul.msk.f32.vlgmr.msrb.gmra.mxu1 %vm134_vm0, %v530_v17  ;;  %1353 = vmatmul.msk.f32.gmra.mxu2 %vm134_vm0, %v172_v33  ;;  %v1443_v17 = vmov 2131351028  }
 0x3f3   :  { %603 = vmatpush.msrb.mxu1 %v563_v35  ;;  %1051 = vmatpush.msra.mxu3 %v1010_v39  ;;  %v1089_v35 = vld [vmem:[%s2197_s5 + $0x1b8] sm:$0xff] }
 0x3f4   :  { %1103 = vmatpush.msra.mxu0 %v1089_v35 }
 0x3f5   :  { %604 = vmatpush.msrb.mxu1 %v562_v36  ;;  %v1088_v36 = vld [vmem:[%s2197_s5 + $0x1b0] sm:$0xff] }
 0x3f6   :  { %1104 = vmatpush.msra.mxu0 %v1088_v36 }
 0x3f7   :  { %605 = vmatpush.msrb.mxu1 %v561_v27 }
 0x3f8   :  { %1355 = vmatmul.msk.f32.gmra.mxu3 %vm76_vm7, %v687_v32 }
 0x3f9   :  { %606 = vmatpush.msrb.mxu1 %v560_v37  ;;  %v1087_v37 = vld [vmem:[%s2197_s5 + $0x1a8] sm:$0xff] }
 0x3fa   :  { %1105 = vmatpush.msra.mxu0 %v1087_v37 }
 0x3fc   :  { %1106 = vmatpush.msra.mxu0 %v1086_v46 }
 0x3fe   :  { %1107 = vmatpush.msra.mxu0 %v1085_v47 }
 0x400   :  { %1364 = vmatmul.msk.f32.vlgmr.msra.gmra.mxu3 %vm76_vm7, %v1676_v49 }
 0x46d   :  { %v676_v50 = vpop.f32.mrf.mxu2 }
 0x46f   :  { %v557_v41 = vpop.f32.mrf.mxu1 }
 0x470   :  { %v558_v42 = vadd.f32 %v1392_v40, %v557_v41 }
 0x472   :  { %1347 = vmatmul.msk.f32.vlgmr.msra.gmra.mxu1 %vm134_vm0, %v558_v42 }
 0x473   :  { %v709_v49 = vpop.f32.mrf.mxu3  ;;  %636 = vmatpush.msra.mxu1 %v618_v4 }
 0x474   :  { %v710_v51 = vadd.f32 %v709_v49, %v676_v50 }
 0x475   :  { %v679_v1 = vpop.f32.mrf.mxu2  ;;  %637 = vmatpush.msra.mxu1 %v617_v22  ;;  %v1015_v22 = vld [vmem:[%s2200_s6 + $0x98] sm:$0xff] }
 0x476   :  { %v717_v52 = vadd.f32 %v1393_v48, %v710_v51  ;;  %v1084_v51 = vld [vmem:[%s2197_s5 + $0x190] sm:$0xff]  ;;  %1028 = vmatpush.msra.mxu2 %v1015_v22 }
 0x477   :  { %638 = vmatpush.msra.mxu1 %v616_v29  ;;  %1108 = vmatpush.msra.mxu0 %v1084_v51 }
 0x478   :  { %1310 = vst.msk [vmem:[%s2202_s8 + $0x10] sm:$0xff] %vm76_vm7, %v717_v52  ;;  %1361 = vmatmul.msk.f32.vlgmr.msrb.gmra.mxu0 %vm76_vm7, %v717_v52 }
 0x479   :  { %639 = vmatpush.msra.mxu1 %v615_v30  ;;  %v880_v30 = vld [vmem:[%s2197_s5 + $0x128] sm:$0xff] }
 0x47a   :  { %1348 = vmatmul.msk.f32.vlgmr.msrb.gmra.mxu1 %vm134_vm0, %v1629_v14  ;;  %v1385_v14 = vld [vmem:[%s2196_s4 + $0x1] ss:$0 sm:$0xff] }
 0x47b   :  { %v721_v54 = vmul.f32 %v1385_v14, %v1497_v3  ;;  %v712_v2 = vpop.f32.mrf.mxu3  ;;  %v1083_v14 = vld [vmem:[%s2197_s5 + $0x188] sm:$0xff] }
 0x47c   :  { %v713_v58 = vadd.f32 %v712_v2, %v679_v1  ;;  %1109 = vmatpush.msra.mxu0 %v1083_v14 }
 0x47d   :  { %v1807_v56 = vadd.f32 %v1386_v53, %v721_v54 }
 0x47e   :  { %v718_v3 = vadd.f32 %v1393_v48, %v713_v58 }
 0x47f   :  { %v728_v57 = vand.u32 2139095040, %v1807_v56  ;;  %v725_v10 = vand.u32 2147483647, %v1807_v56  ;;  %vm727_vm2 = vcmp.lt.s32.totalorder %v1807_v56, 0 }
 0x480   :  { %1312 = vst.msk [vmem:[%s2202_s8 + $0x20] sm:$0xff] %vm76_vm7, %v718_v3 }
 0x481   :  { %v729_v59 = vshrl.u32 %v728_v57, 23  ;;  %v732_v28 = vand.u32 8388607, %v725_v10  ;;  %v1082_v57 = vld [vmem:[%s2197_s5 + $0x180] sm:$0xff] }
 0x482   :  { %1110 = vmatpush.msra.mxu0 %v1082_v57 }
 0x483   :  { %v1356_v60 = vadd.s32 4294967169, %v729_v59  ;;  %v733_v38 = vor.u32 8388608, %v732_v28  ;;  %v1081_v59 = vld [vmem:[%s2203_s3] sm:$0xff] }
 0x484   :  { %1365 = vmatmul.msk.f32.vlgmr.msra.gmra.mxu0 %vm46_vm6, %v1081_v59 }
 0x485   :  { %v735_v61 = vadd.s32 1, %v1356_v60  ;;  %v1883_v48 = vshll.u32 %v733_v38, 8  ;;  %v879_v38 = vld [vmem:[%s2197_s5 + $0x120] sm:$0xff] }
 0x487   :  { %vm736_vm3 = vcmp.gt.s32.totalorder %v735_v61, 0  ;;  %v774_v54 = vand.u32 65535, %v1883_v48  ;;  %v775_v1 = vshrl.u32 %v1883_v48, 16 }
 0x488   :  { %v737_v62 = vsel %vm736_vm3, %v735_v61, 0  ;;  %vm1962_vm3 = vcmp.le.f32.partialorder %v725_v10, 0.7853982  ;;  %v1202_v10 = vld [vmem:[%s2197_s5 + $0x230] sm:$0xff] }
 0x489   :  { %v739_v63 = vand.u32 31, %v737_v62  ;;  %v1822_v11 = vshrl.u32 %v737_v62, 5 }
 0x48b   :  { %v1813_v5 = vsub.s32 32, %v739_v63  ;;  %v751_v13 = vshll.u32 %v1441_v12, %v739_v63  ;;  %v754_v43 = vshll.u32 %v1439_v6, %v739_v63  ;;  %v742_v23 = vshll.u32 %v1444_v45, %v739_v63 }
 0x48c   :  { %v745_v24 = vshll.u32 %v1442_v15, %v739_v63  ;;  %v748_v25 = vshll.u32 %v1443_v17, %v739_v63  ;;  %vm760_vm4 = vcmp.lt.s32.totalorder %v1822_v11, 4  ;;  %vm757_vm5 = vcmp.lt.s32.totalorder %v1822_v11, 1 }
 0x48d   :  { %v752_v7 = vshrl.u32 %v1439_v6, %v1813_v5  ;;  %v755_v9 = vshrl.u32 %v1440_v8, %v1813_v5  ;;  %v743_v16 = vshrl.u32 %v1442_v15, %v1813_v5  ;;  %v746_v20 = vshrl.u32 %v1443_v17, %v1813_v5  ;;  %v1394_v15 = vld [vmem:[%s2196_s4 + $0x9] ss:$0 sm:$0xff] }
 0x48e   :  { %v749_v21 = vshrl.u32 %v1441_v12, %v1813_v5  ;;  %vm759_vm8 = vcmp.lt.s32.totalorder %v1822_v11, 3  ;;  %vm758_vm9 = vcmp.lt.s32.totalorder %v1822_v11, 2 }
 0x48f   :  { %v753_v44 = vor.u32 %v752_v7, %v751_v13  ;;  %v756_v26 = vor.u32 %v755_v9, %v754_v43  ;;  %v1839_v31 = vor.u32 %v743_v16, %v742_v23  ;;  %v1841_v32 = vor.u32 %v746_v20, %v745_v24  ;;  %v882_v23 = vld [vmem:[%s2197_s5 + $0x138] sm:$0xff]  ;;  %v1014_v24 = vld [vmem:[%s2200_s6 + $0x90] sm:$0xff] }
 0x490   :  { %v1843_v33 = vor.u32 %v749_v21, %v748_v25  ;;  %923 = vmatpush.msrb.mxu1 %v882_v23  ;;  %1029 = vmatpush.msra.mxu2 %v1014_v24  ;;  %v1141_v23 = vld [vmem:[%s2197_s5 + $0x1d0] sm:$0xff] }
 0x491   :  { %v766_v34 = vsel %vm760_vm4, %v753_v44, 920167782  ;;  %v770_v27 = vsel %vm760_vm4, %v756_v26, 1326507024  ;;  %v765_v39 = vsel %vm757_vm5, %v1839_v31, %v1841_v32  ;;  %v881_v26 = vld [vmem:[%s2197_s5 + $0x130] sm:$0xff] }
 0x492   :  { %v767_v40 = vsel %vm759_vm8, %v1843_v33, %v766_v34  ;;  %v769_v41 = vsel %vm757_vm5, %v1841_v32, %v1843_v33  ;;  %v771_v42 = vsel %vm759_vm8, %v753_v44, %v770_v27  ;;  %v1013_v34 = vld [vmem:[%s2200_s6 + $0x88] sm:$0xff]  ;;  %924 = vmatpush.msrb.mxu1 %v881_v26  ;;  %v762_v14 = vsel %vm760_vm4, %v1843_v33, 2102212464 }
 0x493   :  { %v768_v49 = vsel %vm758_vm9, %v765_v39, %v767_v40  ;;  %v772_v50 = vsel %vm758_vm9, %v769_v41, %v771_v42  ;;  %v1012_v39 = vld [vmem:[%s2200_s6 + $0x80] sm:$0xff]  ;;  %1030 = vmatpush.msra.mxu2 %v1013_v34  ;;  %v960_v40 = vld [vmem:[%s2197_s5 + $0x178] sm:$0xff]  ;;  %v1201_v34 = vld [vmem:[%s2197_s5 + $0x228] sm:$0xff] }
 0x494   :  { %v799_v52 = vshrl.u32 %v768_v49, 16  ;;  %v777_v53 = vshrl.u32 %v772_v50, 16  ;;  %v798_v62 = vand.u32 65535, %v768_v49  ;;  %v776_v63 = vand.u32 65535, %v772_v50  ;;  %925 = vmatpush.msrb.mxu1 %v880_v30  ;;  %v957_v30 = vld [vmem:[%s2197_s5 + $0x160] sm:$0xff] }
 0x495   :  { %1031 = vmatpush.msra.mxu2 %v1012_v39  ;;  %v1259_v39 = vld [vmem:[%s2197_s5 + $0x270] sm:$0xff] }
 0x496   :  { %v801_v60 = vmul.u32 %v799_v52, %v774_v54  ;;  %v779_v61 = vmul.u32 %v777_v53, %v774_v54  ;;  %v800_v3 = vmul.u32 %v798_v62, %v774_v54  ;;  %v802_v6 = vmul.u32 %v798_v62, %v775_v1  ;;  %926 = vmatpush.msrb.mxu1 %v879_v38  ;;  %v1199_v38 = vld [vmem:[%s2197_s5 + $0x218] sm:$0xff] }
 0x497   :  { %v778_v7 = vmul.u32 %v776_v63, %v774_v54  ;;  %v780_v8 = vmul.u32 %v776_v63, %v775_v1  ;;  %v803_v43 = vmul.u32 %v799_v52, %v775_v1  ;;  %v781_v25 = vmul.u32 %v777_v53, %v775_v1 }
 0x498   :  { %v804_v4 = vshll.u32 %v801_v60, 16  ;;  %v782_v58 = vshll.u32 %v779_v61, 16  ;;  %v806_v13 = vshll.u32 %v802_v6, 16  ;;  %v805_v46 = vshrl.u32 %v801_v60, 16 }
 0x499   :  { %v784_v16 = vshll.u32 %v780_v8, 16  ;;  %v783_v47 = vshrl.u32 %v779_v61, 16  ;;  %v807_v51 = vshrl.u32 %v802_v6, 16  ;;  %v785_v52 = vshrl.u32 %v780_v8, 16 }
 0x49a   :  { %vm808_vm10 = vc.u32 %v800_v3, %v804_v4  ;;  %v810_v9 = vadd.s32 %v804_v4, %v800_v3  ;;  %vm786_vm11 = vc.u32 %v778_v7, %v782_v58  ;;  %v788_v12 = vadd.s32 %v782_v58, %v778_v7 }
 0x49b   :  { %v809_v17 = vsel %vm808_vm10, 1, %v1434_v0  ;;  %v787_v21 = vsel %vm786_vm11, 1, %v1434_v0  ;;  %v741_v54 = vshrl.u32 %v1444_v45, %v1813_v5  ;;  %v763_v60 = vsel %vm759_vm8, %v1841_v32, %v762_v14 }
 0x49c   :  { %vm812_vm12 = vc.u32 %v810_v9, %v806_v13  ;;  %vm790_vm13 = vc.u32 %v788_v12, %v784_v16  ;;  %v811_v28 = vadd.s32 %v809_v17, %v803_v43  ;;  %v789_v35 = vadd.s32 %v787_v21, %v781_v25  ;;  %v1969_v25 = vpop.f32.mrf.mxu0 }
 0x49d   :  { %v813_v36 = vsel %vm812_vm12, 1, %v1434_v0  ;;  %v791_v27 = vsel %vm790_vm13, 1, %v1434_v0  ;;  %v959_v0 = vld [vmem:[%s2197_s5 + $0x170] sm:$0xff]  ;;  %v761_v59 = vsel %vm757_vm5, %v741_v54, %v1839_v31  ;;  %v814_v61 = vadd.s32 %v810_v9, %v806_v13  ;;  %v1396_v54 = vld [vmem:[%s2196_s4 + $0xe] ss:$0 sm:$0xff] }
 0x49e   :  { %v815_v41 = vadd.s32 %v813_v36, %v811_v28  ;;  %v793_v42 = vadd.s32 %v791_v27, %v789_v35  ;;  %v764_v63 = vsel %vm758_vm9, %v761_v59, %v763_v60  ;;  %v1203_v28 = vld [vmem:[%s2197_s5 + $0x238] sm:$0xff]  ;;  %v1200_v36 = vld [vmem:[%s2197_s5 + $0x220] sm:$0xff]  ;;  %vm868_vm9 = vweird.f32 %v1807_v56 }
 0x49f   :  { %v818_v1 = vmul.u32 %v1883_v48, %v764_v63  ;;  %1217 = vmatpush.msrb.mxu2 %v1203_v28  ;;  %v1260_v27 = vld [vmem:[%s2197_s5 + $0x278] sm:$0xff] }
 0x4a0   :  { %v816_v49 = vadd.s32 %v815_v41, %v805_v46  ;;  %v794_v50 = vadd.s32 %v793_v42, %v783_v47  ;;  %1274 = vmatpush.msrb.mxu3 %v1260_v27  ;;  %v1198_v41 = vld [vmem:[%s2197_s5 + $0x210] sm:$0xff]  ;;  %v1258_v42 = vld [vmem:[%s2197_s5 + $0x268] sm:$0xff]  ;;  %v1370_v63 = vld [vmem:[%s2203_s3 + $0x18] sm:$0xff] }
 0x4a1   :  { %1218 = vmatpush.msrb.mxu2 %v1202_v10  ;;  %v1197_v47 = vld [vmem:[%s2197_s5 + $0x208] sm:$0xff] }
 0x4a2   :  { %v817_v53 = vadd.s32 %v816_v49, %v807_v51  ;;  %v795_v57 = vadd.s32 %v794_v50, %v785_v52  ;;  %1275 = vmatpush.msrb.mxu3 %v1259_v39  ;;  %v1257_v49 = vld [vmem:[%s2197_s5 + $0x260] sm:$0xff]  ;;  %v1256_v52 = vld [vmem:[%s2197_s5 + $0x258] sm:$0xff]  ;;  %v1397_v10 = vld [vmem:[%s2196_s4 + $0xd] ss:$0 sm:$0xff] }
 0x4a3   :  { %1219 = vmatpush.msrb.mxu2 %v1201_v34  ;;  %v1196_v51 = vld [vmem:[%s2197_s5 + $0x200] sm:$0xff]  ;;  %v1398_v27 = vld [vmem:[%s2196_s4 + $0xc] ss:$0 sm:$0xff] }
 0x4a4   :  { %v821_v62 = vadd.s32 1, %v817_v53  ;;  %vm820_vm14 = vc.u32 %v795_v57, %v814_v61  ;;  %v819_v12 = vadd.s32 %v814_v61, %v795_v57  ;;  %1276 = vmatpush.msrb.mxu3 %v1258_v42  ;;  %v1254_v61 = vld [vmem:[%s2197_s5 + $0x248] sm:$0xff] }
 0x4a5   :  { %1220 = vmatpush.msrb.mxu2 %v1200_v36 }
 0x4a6   :  { %v822_v33 = vsel %vm820_vm14, %v821_v62, %v817_v53  ;;  %1277 = vmatpush.msrb.mxu3 %v1257_v49  ;;  %v1255_v53 = vld [vmem:[%s2197_s5 + $0x250] sm:$0xff]  ;;  %v1253_v62 = vld [vmem:[%s2197_s5 + $0x240] sm:$0xff] }
 0x4a7   :  { %1221 = vmatpush.msrb.mxu2 %v1199_v38 }
 0x4a8   :  { %1278 = vmatpush.msrb.mxu3 %v1256_v52 }
 0x4a9   :  { %1222 = vmatpush.msrb.mxu2 %v1198_v41 }
 0x4aa   :  { %1279 = vmatpush.msrb.mxu3 %v1255_v53 }
 0x4ab   :  { %1223 = vmatpush.msrb.mxu2 %v1197_v47 }
 0x4ac   :  { %1280 = vmatpush.msrb.mxu3 %v1254_v61 }
 0x4ad   :  { %1224 = vmatpush.msrb.mxu2 %v1196_v51 }
 0x4ae   :  { %1281 = vmatpush.msrb.mxu3 %v1253_v62 }
 0x4af   :  { %1371 = vmatmul.msk.f32.vlgmr.msrb.gmra.mxu3 %vm46_vm6, %v1370_v63 }
 0x4ef   :  { %v588_v2 = vpop.f32.mrf.mxu1 }
 0x4f7   :  { %v608_v20 = vpop.f32.mrf.mxu1 }
 0x4f8   :  { %v609_v44 = vadd.f32 %v608_v20, %v588_v2  ;;  %v823_v2 = vadd.s32 %v822_v33, %v818_v1 }
 0x4fa   :  { %v613_v29 = vadd.f32 %v1394_v15, %v609_v44  ;;  %v824_v5 = vadd.s32 536870912, %v823_v2 }
 0x4fc   :  { %v614_v37 = vmax.f32 %v613_v29, 0.0  ;;  %v1954_v45 = vshrl.u32 %v824_v5, 30  ;;  %v958_v29 = vld [vmem:[%s2197_s5 + $0x168] sm:$0xff] }
 0x4fe   :  { %1349 = vmatmul.msk.f32.vlgmr.msra.gmra.mxu1 %vm134_vm0, %v614_v37  ;;  %v826_v4 = vshll.u32 %v1954_v45, 30  ;;  %v1992_v37 = vpop.f32.mrf.mxu0 }
 0x4ff   :  { %976 = vmatpush.msra.mxu1 %v960_v40 }
 0x500   :  { %v827_v31 = vsub.s32 %v823_v2, %v826_v4  ;;  %v849_v2 = vsub.s32 4, %v1954_v45 }
 0x501   :  { %977 = vmatpush.msra.mxu1 %v959_v0 }
 0x502   :  { %v829_v58 = vsub.s32 0, %v827_v31  ;;  %vm828_vm15 = vcmp.lt.s32.totalorder %v827_v31, 0 }
 0x503   :  { %978 = vmatpush.msra.mxu1 %v958_v29 }
 0x504   :  { %v830_v3 = vsel %vm828_vm15, %v829_v58, %v827_v31 }
 0x505   :  { %v831_v32 = vclz %v830_v3  ;;  %979 = vmatpush.msra.mxu1 %v957_v30  ;;  %v1053_v30 = vpop.f32.mrf.mxu3 }
 0x506   :  { %v1112_v57 = vpop.f32.mrf.mxu0 }
 0x507   :  { %v1357_v6 = vadd.s32 4294967294, %v831_v32  ;;  %v2024_v60 = vadd.f32 %v1396_v54, %v1112_v57 }
 0x509   :  { %vm1358_vm1 = vcmp.lt.s32.totalorder %v1357_v6, 0  ;;  %v1115_v1 = vsel %vm134_vm0, %v2024_v60, 0.0 }
 0x50a   :  { %v834_v7 = vsel %vm1358_vm1, 0, %v1357_v6  ;;  %1116 = vadd.xlane.f32.xlu2 %v1115_v1  ;;  %v1395_v6 = vld [vmem:[%s2196_s4 + $0xa] ss:$0 sm:$0xff] }
 0x50b   :  { %v839_v8 = vsub.s32 4294967266, %v834_v7  ;;  %v835_v9 = vsub.s32 32, %v834_v7  ;;  %v836_v15 = vshll.u32 %v827_v31, %v834_v7  ;;  %v850_v31 = vsel %vm727_vm2, %v849_v2, %v1954_v45  ;;  %v1145_v45 = vld [vmem:[%s2197_s5 + $0x1f0] sm:$0xff] }
 0x50c   :  { %v852_v3 = vsel %vm1962_vm3, 0, %v850_v31 }
 0x50d   :  { %v840_v11 = vadd.s32 127, %v839_v8  ;;  %v837_v48 = vshrl.u32 %v819_v12, %v835_v9  ;;  %v869_v8 = vand.u32 3, %v852_v3 }
 0x50f   :  { %v841_v13 = vshll.u32 %v840_v11, 23  ;;  %v838_v17 = vor.u32 %v837_v48, %v836_v15  ;;  %vm871_vm4 = vcmp.eq.s32.totalorder %v869_v8, 0  ;;  %vm874_vm5 = vcmp.eq.s32.totalorder %v869_v8, 2 }
 0x510   :  { %vm870_vm8 = vcmp.lt.s32.totalorder %v869_v8, 2 }
 0x511   :  { %v842_v16 = vor.u32 4788187, %v841_v13  ;;  %v845_v21 = vcvt.s32.f32 %v838_v17  ;;  %v1146_v13 = vld [vmem:[%s2197_s5 + $0x1f8] sm:$0xff] }
 0x513   :  { %v843_v20 = vand.u32 2147483647, %v842_v16  ;;  %v1144_v16 = vld [vmem:[%s2197_s5 + $0x1e8] sm:$0xff] }
 0x515   :  { %v846_v43 = vmul.f32 %v845_v21, %v843_v20  ;;  %v1143_v20 = vld [vmem:[%s2197_s5 + $0x1e0] sm:$0xff] }
 0x517   :  { %v847_v44 = vxor.u32 2147483648, %v846_v43 }
 0x519   :  { %v848_v22 = vsel %vm727_vm2, %v847_v44, %v846_v43  ;;  %v1368_v43 = vld [vmem:[%s2203_s3 + $0x10] sm:$0xff]  ;;  %v1142_v44 = vld [vmem:[%s2197_s5 + $0x1d8] sm:$0xff] }
 0x51a   :  { %v851_v24 = vsel %vm1962_vm3, %v1807_v56, %v848_v22  ;;  %v1139_v56 = vld [vmem:[%s2197_s5 + $0x1c0] sm:$0xff] }
 0x51b   :  { %v853_v26 = vmul.f32 %v851_v24, %v851_v24 }
 0x51d   :  { %v861_v35 = vmul.f32 -0.00019511016, %v853_v26  ;;  %v854_v0 = vmul.f32 -0.001358992, %v853_v26 }
 0x51f   :  { %v862_v40 = vadd.f32 0.008332121, %v861_v35  ;;  %v855_v50 = vadd.f32 0.041655596, %v854_v0 }
 0x521   :  { %v863_v46 = vmul.f32 %v862_v40, %v853_v26  ;;  %v856_v59 = vmul.f32 %v855_v50, %v853_v26 }
 0x523   :  { %v864_v14 = vadd.f32 -0.16666654, %v863_v46  ;;  %v857_v5 = vadd.f32 -0.4999988, %v856_v59  ;;  %v82_v46 = vpop.xlane.xlu0 %81 }
 0x524   :  { %v91_v51 = vmul.f32 %v1679_v55, %v82_v46 }
 0x525   :  { %v865_v33 = vmul.f32 %v864_v14, %v853_v26  ;;  %v858_v58 = vmul.f32 %v857_v5, %v853_v26  ;;  %v1366_v26 = vld [vmem:[%s2203_s3 + $0x8] sm:$0xff]  ;;  %v1401_v14 = vld [vmem:[%s2196_s4 + $0x11] ss:$0 sm:$0xff] }
 0x526   :  { %v2110_v61 = vsub.f32 %v1690_v18, %v91_v51 }
 0x527   :  { %v866_v4 = vadd.f32 1.0, %v865_v33  ;;  %v859_v7 = vadd.f32 1.0, %v858_v58 }
 0x528   :  { %v95_v1 = vmul.f32 %v2110_v61, %v2110_v61 }
 0x529   :  { %v867_v32 = vmul.f32 %v866_v4, %v851_v24  ;;  %v875_v48 = vxor.u32 2147483648, %v859_v7  ;;  %v1140_v24 = vld [vmem:[%s2197_s5 + $0x1c8] sm:$0xff] }
 0x52a   :  { %v99_v5 = vsel %vm76_vm7, %v95_v1, 0.0 }
 0x52b   :  { %v872_v9 = vxor.u32 2147483648, %v867_v32  ;;  %v876_v17 = vsel %vm874_vm5, %v875_v48, %v867_v32 }
 0x52d   :  { %v873_v15 = vsel %vm871_vm4, %v859_v7, %v872_v9 }
 0x52e   :  { %v877_v21 = vsel %vm870_vm8, %v873_v15, %v876_v17 }
 0x52f   :  { %v878_v22 = vsel %vm868_vm9, nan, %v877_v21 }
 0x532   :  { %v1283_v53 = vpop.f32.mrf.mxu3 }
 0x533   :  { %v1284_v62 = vadd.f32 %v1401_v14, %v1283_v53 }
 0x535   :  { %v1286_v33 = vsel %vm134_vm0, %v1284_v62, 0.0 }
 0x57b   :  { %v641_v11 = vpop.f32.mrf.mxu1 }
 0x57c   :  { %v642_v12 = vadd.f32 %v1395_v6, %v641_v11 }
 0x57d   :  { %v1117_v59 = vpop.xlane.xlu2 %1116 }
 0x57e   :  { %1308 = vst.msk [vmem:[%s2202_s8] sm:$0xff] %vm134_vm0, %v642_v12  ;;  %1360 = vmatmul.msk.f32.vlgmr.msrb.gmra.mxu1 %vm134_vm0, %v642_v12  ;;  %1363 = vmatmul.msk.f32.vlgmr.msra.gmra.mxu2 %vm134_vm0, %v642_v12  ;;  %v1118_v63 = vmul.f32 %v1117_v59, %v1517_v19 }
 0x57f   :  { %1160 = vmatpush.msrb.mxu1 %v1146_v13 }
 0x580   :  { %v2117_v2 = vsub.f32 %v2024_v60, %v1118_v63 }
 0x581   :  { %1161 = vmatpush.msrb.mxu1 %v1145_v45 }
 0x582   :  { %v1120_v18 = vmul.f32 %v2117_v2, %v2117_v2 }
 0x583   :  { %1162 = vmatpush.msrb.mxu1 %v1144_v16 }
 0x584   :  { %v1121_v4 = vsel %vm134_vm0, %v1120_v18, 0.0 }
 0x585   :  { %1163 = vmatpush.msrb.mxu1 %v1143_v20 }
 0x586   :  { %1362 = vmatmul.msk.f32.vlgmr.msra.gmra.mxu1 %vm134_vm0, %v878_v22  ;;  %1369 = vmatmul.msk.f32.vlgmr.msrb.gmra.mxu2 %vm46_vm6, %v1368_v43 }
 0x587   :  { %1164 = vmatpush.msrb.mxu1 %v1142_v44 }
 0x589   :  { %1165 = vmatpush.msrb.mxu1 %v1141_v23 }
 0x58b   :  { %1166 = vmatpush.msrb.mxu1 %v1140_v24 }
 0x58d   :  { %1167 = vmatpush.msrb.mxu1 %v1139_v56 }
 0x58e   :  { %1367 = vmatmul.msk.f32.vlgmr.msrb.gmra.mxu1 %vm46_vm6, %v1366_v26 }
 0x5fb   :  { %v928_v28 = vpop.f32.mrf.mxu1 }
 0x5fc   :  { %v929_v29 = vadd.f32 %v928_v28, %v1969_v25  ;;  %v1400_v25 = vld [vmem:[%s2196_s4 + $0x10] ss:$0 sm:$0xff] }
 0x5fe   :  { %v956_v36 = vadd.f32 %v1992_v37, %v929_v29  ;;  %v1399_v37 = vld [vmem:[%s2196_s4 + $0xf] ss:$0 sm:$0xff] }
 0x601   :  { %v1033_v34 = vpop.f32.mrf.mxu2 }
 0x602   :  { %v1054_v35 = vadd.f32 %v1053_v30, %v1033_v34 }
 0x603   :  { %v981_v38 = vpop.f32.mrf.mxu1 }
 0x604   :  { %v984_v39 = vadd.f32 %v981_v38, %v956_v36  ;;  %v1058_v40 = vadd.f32 %v1397_v10, %v1054_v35 }
 0x606   :  { %v1059_v41 = vsel %vm76_vm7, %v1058_v40, 0.0  ;;  %v987_v42 = vadd.f32 %v1398_v27, %v984_v39 }
 0x607   :  { %1060 = vadd.xlane.f32.xlu1 %v1059_v41 }
 0x608   :  { %v988_v0 = vsel %vm134_vm0, %v987_v42, 0.0 }
 0x609   :  { %989 = vadd.xlane.f32.xlu2 %v988_v0  ;;  %v1226_v47 = vpop.f32.mrf.mxu2 }
 0x60a   :  { %v1227_v49 = vadd.f32 %v1400_v25, %v1226_v47 }
 0x60b   :  { %v1169_v50 = vpop.f32.mrf.mxu1 }
 0x60c   :  { %v1170_v52 = vadd.f32 %v1399_v37, %v1169_v50  ;;  %v1229_v57 = vsel %vm134_vm0, %v1227_v49, 0.0 }
 0x60e   :  { %v1172_v54 = vsel %vm134_vm0, %v1170_v52, 0.0 }
 0x60f   :  { %1173 = vadd.xlane.f32.xlu1 %v1172_v54 }
 0x611   :  { %1230 = vadd.xlane.f32.xlu2 %v1229_v57 }
 0x617   :  { %1287 = vadd.xlane.f32.xlu1 %v1286_v33 }
 0x619   :  { %100 = vadd.xlane.f32.xlu2 %v99_v5 }
 0x61f   :  { %1122 = vadd.xlane.f32.xlu1 %v1121_v4 }
 0x67a   :  { %v1061_v31 = vpop.xlane.xlu1 %1060 }
 0x67b   :  { %v1062_v58 = vmul.f32 %v1061_v31, %v1679_v55 }
 0x67c   :  { %v990_v3 = vpop.xlane.xlu2 %989 }
 0x67d   :  { %v2124_v32 = vsub.f32 %v1058_v40, %v1062_v58  ;;  %v991_v6 = vmul.f32 %v990_v3, %v1517_v19 }
 0x67f   :  { %v2127_v60 = vsub.f32 %v987_v42, %v991_v6  ;;  %v1064_v7 = vmul.f32 %v2124_v32, %v2124_v32 }
 0x681   :  { %v1065_v8 = vsel %vm76_vm7, %v1064_v7, 0.0  ;;  %v993_v11 = vmul.f32 %v2127_v60, %v2127_v60 }
 0x682   :  { %v1174_v9 = vpop.xlane.xlu1 %1173  ;;  %1066 = vadd.xlane.f32.xlu2 %v1065_v8 }
 0x683   :  { %v1175_v12 = vmul.f32 %v1174_v9, %v1517_v19  ;;  %v994_v13 = vsel %vm134_vm0, %v993_v11, 0.0 }
 0x684   :  { %995 = vadd.xlane.f32.xlu1 %v994_v13  ;;  %v1231_v48 = vpop.xlane.xlu2 %1230 }
 0x685   :  { %v2136_v45 = vsub.f32 %v1170_v52, %v1175_v12  ;;  %v1232_v15 = vmul.f32 %v1231_v48, %v1517_v19 }
 0x687   :  { %v2139_v16 = vsub.f32 %v1227_v49, %v1232_v15  ;;  %v1177_v17 = vmul.f32 %v2136_v45, %v2136_v45 }
 0x689   :  { %v1178_v20 = vsel %vm134_vm0, %v1177_v17, 0.0  ;;  %v1234_v21 = vmul.f32 %v2139_v16, %v2139_v16 }
 0x68a   :  { %1179 = vadd.xlane.f32.xlu0 %v1178_v20  ;;  %v1288_v43 = vpop.xlane.xlu1 %1287 }
 0x68b   :  { %v1289_v44 = vmul.f32 %v1288_v43, %v1517_v19  ;;  %v1235_v22 = vsel %vm134_vm0, %v1234_v21, 0.0 }
 0x68c   :  { %1236 = vadd.xlane.f32.xlu2 %v1235_v22  ;;  %v101_v23 = vpop.xlane.xlu2 %100 }
 0x68d   :  { %v2148_v24 = vsub.f32 %v1284_v62, %v1289_v44  ;;  %v103_v56 = vmul.f32 %v101_v23, %v1679_v55 }
 0x68f   :  { %v105_v26 = vadd.f32 1e-05, %v103_v56  ;;  %v1291_v28 = vmul.f32 %v2148_v24, %v2148_v24 }
 0x691   :  { %1420 = vrsqrt.f32 %v105_v26  ;;  %v1292_v29 = vsel %vm134_vm0, %v1291_v28, 0.0  ;;  %vm122_vm10 = vweird.f32 %v105_v26 }
 0x692   :  { %v1123_v10 = vpop.xlane.xlu1 %1122  ;;  %1293 = vadd.xlane.f32.xlu1 %v1292_v29 }
 0x693   :  { %v1124_v30 = vmul.f32 %v1123_v10, %v1517_v19 }
 0x695   :  { %v1125_v34 = vadd.f32 1e-05, %v1124_v30 }
 0x697   :  { %v1421_v35 = vpop.eup %1420  ;;  %1422 = vrsqrt.f32 %v1125_v34  ;;  %vm1132_vm13 = vweird.f32 %v1125_v34 }
 0x698   :  { %v117_v36 = vmul.f32 %v1421_v35, %v105_v26  ;;  %vm123_vm6 = vweird.f32 %v1421_v35 }
 0x699   :  { %vm124_vm11 = vmor %vm122_vm10, %vm123_vm6 }
 0x69a   :  { %v118_v27 = vmul.f32 %v1421_v35, %v117_v36 }
 0x69c   :  { %v119_v38 = vmul.f32 0.5, %v118_v27 }
 0x69d   :  { %v1423_v39 = vpop.eup %1422 }
 0x69e   :  { %v120_v40 = vsub.f32 1.5, %v119_v38  ;;  %v1127_v41 = vmul.f32 %v1423_v39, %v1125_v34  ;;  %vm1133_vm12 = vweird.f32 %v1423_v39 }
 0x69f   :  { %vm1134_vm14 = vmor %vm1132_vm13, %vm1133_vm12 }
 0x6a0   :  { %v121_v42 = vmul.f32 %v1421_v35, %v120_v40  ;;  %v1128_v25 = vmul.f32 %v1423_v39, %v1127_v41 }
 0x6a2   :  { %v125_v0 = vsel %vm124_vm11, %v1421_v35, %v121_v42  ;;  %v1129_v37 = vmul.f32 0.5, %v1128_v25 }
 0x6a3   :  { %v127_v46 = vmul.f32 %v125_v0, %v2110_v61 }
 0x6a4   :  { %v1130_v47 = vsub.f32 1.5, %v1129_v37 }
 0x6a5   :  { %1311 = vst.msk [vmem:[%s2202_s8 + $0x18] sm:$0xff] %vm76_vm7, %v127_v46 }
 0x6a6   :  { %v1131_v49 = vmul.f32 %v1423_v39, %v1130_v47 }
 0x6a8   :  { %v1135_v50 = vsel %vm1134_vm14, %v1423_v39, %v1131_v49 }
 0x6a9   :  { %v1136_v51 = vmul.f32 %v1135_v50, %v2117_v2 }
 0x6ab   :  { %1315 = vst.msk [vmem:[%s2202_s8 + $0x38] sm:$0xff] %vm134_vm0, %v1136_v51 }
 0x6f5   :  { %v1067_v52 = vpop.xlane.xlu2 %1066 }
 0x6f6   :  { %v1068_v14 = vmul.f32 %v1067_v52, %v1679_v55 }
 0x6f7   :  { %v996_v53 = vpop.xlane.xlu1 %995 }
 0x6f8   :  { %v1069_v54 = vadd.f32 1e-05, %v1068_v14  ;;  %v997_v57 = vmul.f32 %v996_v53, %v1517_v19 }
 0x6fa   :  { %1424 = vrsqrt.f32 %v1069_v54  ;;  %v998_v59 = vadd.f32 1e-05, %v997_v57  ;;  %vm1076_vm1 = vweird.f32 %v1069_v54 }
 0x6fc   :  { %1426 = vrsqrt.f32 %v998_v59  ;;  %vm1005_vm4 = vweird.f32 %v998_v59 }
 0x6fd   :  { %v1180_v61 = vpop.xlane.xlu0 %1179 }
 0x6fe   :  { %v1181_v62 = vmul.f32 %v1180_v61, %v1517_v19 }
 0x6ff   :  { %v1237_v63 = vpop.xlane.xlu2 %1236 }
 0x700   :  { %v1425_v33 = vpop.eup %1424  ;;  %v1182_v1 = vadd.f32 1e-05, %v1181_v62  ;;  %v1238_v2 = vmul.f32 %v1237_v63, %v1517_v19 }
 0x701   :  { %v1071_v5 = vmul.f32 %v1425_v33, %v1069_v54  ;;  %vm1077_vm15 = vweird.f32 %v1425_v33 }
 0x702   :  { %v1427_v18 = vpop.eup %1426  ;;  %1428 = vrsqrt.f32 %v1182_v1  ;;  %v1239_v4 = vadd.f32 1e-05, %v1238_v2  ;;  %vm1078_vm3 = vmor %vm1076_vm1, %vm1077_vm15  ;;  %vm1189_vm9 = vweird.f32 %v1182_v1 }
 0x703   :  { %v1072_v55 = vmul.f32 %v1425_v33, %v1071_v5  ;;  %v1000_v31 = vmul.f32 %v1427_v18, %v998_v59  ;;  %vm1006_vm2 = vweird.f32 %v1427_v18 }
 0x704   :  { %1430 = vrsqrt.f32 %v1239_v4  ;;  %vm1007_vm5 = vmor %vm1005_vm4, %vm1006_vm2 }
 0x705   :  { %v1073_v58 = vmul.f32 0.5, %v1072_v55  ;;  %v1001_v3 = vmul.f32 %v1427_v18, %v1000_v31  ;;  %v1294_v6 = vpop.xlane.xlu1 %1293 }
 0x706   :  { %v1295_v7 = vmul.f32 %v1294_v6, %v1517_v19 }
 0x707   :  { %v1074_v8 = vsub.f32 1.5, %v1073_v58  ;;  %v1002_v11 = vmul.f32 0.5, %v1001_v3 }
 0x708   :  { %v1429_v9 = vpop.eup %1428  ;;  %v1296_v12 = vadd.f32 1e-05, %v1295_v7 }
 0x709   :  { %v1075_v13 = vmul.f32 %v1425_v33, %v1074_v8  ;;  %v1003_v48 = vsub.f32 1.5, %v1002_v11  ;;  %v1184_v15 = vmul.f32 %v1429_v9, %v1182_v1  ;;  %vm1190_vm8 = vweird.f32 %v1429_v9 }
 0x70a   :  { %v1431_v17 = vpop.eup %1430  ;;  %1432 = vrsqrt.f32 %v1296_v12  ;;  %vm1191_vm10 = vmor %vm1189_vm9, %vm1190_vm8  ;;  %vm1303_vm13 = vweird.f32 %v1296_v12 }
 0x70b   :  { %v1079_v20 = vsel %vm1078_vm3, %v1425_v33, %v1075_v13  ;;  %v1004_v21 = vmul.f32 %v1427_v18, %v1003_v48  ;;  %v1185_v43 = vmul.f32 %v1429_v9, %v1184_v15  ;;  %v1241_v44 = vmul.f32 %v1431_v17, %v1239_v4 }
 0x70c   :  { %v1080_v19 = vmul.f32 %v1079_v20, %v2124_v32  ;;  %vm1247_vm6 = vweird.f32 %v1431_v17 }
 0x70d   :  { %v1008_v22 = vsel %vm1007_vm5, %v1427_v18, %v1004_v21  ;;  %v1186_v23 = vmul.f32 0.5, %v1185_v43  ;;  %v1242_v56 = vmul.f32 %v1431_v17, %v1241_v44 }
 0x70e   :  { %1314 = vst.msk [vmem:[%s2202_s8 + $0x30] sm:$0xff] %vm76_vm7, %v1080_v19  ;;  %v1009_v26 = vmul.f32 %v1008_v22, %v2127_v60  ;;  %vm1246_vm7 = vweird.f32 %v1239_v4 }
 0x70f   :  { %v1187_v28 = vsub.f32 1.5, %v1186_v23  ;;  %v1243_v29 = vmul.f32 0.5, %v1242_v56  ;;  %vm1248_vm11 = vmor %vm1246_vm7, %vm1247_vm6 }
 0x710   :  { %v1433_v10 = vpop.eup %1432  ;;  %1313 = vst.msk [vmem:[%s2202_s8 + $0x28] sm:$0xff] %vm134_vm0, %v1009_v26 }
 0x711   :  { %v1188_v32 = vmul.f32 %v1429_v9, %v1187_v28  ;;  %v1244_v30 = vsub.f32 1.5, %v1243_v29  ;;  %v1298_v34 = vmul.f32 %v1433_v10, %v1296_v12  ;;  %vm1304_vm12 = vweird.f32 %v1433_v10 }
 0x712   :  { %vm1305_vm14 = vmor %vm1303_vm13, %vm1304_vm12 }
 0x713   :  { %v1192_v35 = vsel %vm1191_vm10, %v1429_v9, %v1188_v32  ;;  %v1245_v36 = vmul.f32 %v1431_v17, %v1244_v30  ;;  %v1299_v27 = vmul.f32 %v1433_v10, %v1298_v34 }
 0x714   :  { %v1193_v60 = vmul.f32 %v1192_v35, %v2136_v45 }
 0x715   :  { %v1249_v38 = vsel %vm1248_vm11, %v1431_v17, %v1245_v36  ;;  %v1300_v39 = vmul.f32 0.5, %v1299_v27 }
 0x716   :  { %1316 = vst.msk [vmem:[%s2202_s8 + $0x40] sm:$0xff] %vm134_vm0, %v1193_v60  ;;  %v1250_v40 = vmul.f32 %v1249_v38, %v2139_v16 }
 0x717   :  { %v1301_v41 = vsub.f32 1.5, %v1300_v39 }
 0x718   :  { %1317 = vst.msk [vmem:[%s2202_s8 + $0x48] sm:$0xff] %vm134_vm0, %v1250_v40 }
 0x719   :  { %v1302_v42 = vmul.f32 %v1433_v10, %v1301_v41 }
 0x71b   :  { %v1306_v45 = vsel %vm1305_vm14, %v1433_v10, %v1302_v42 }
 0x71c   :  { %v1307_v25 = vmul.f32 %v1306_v45, %v2148_v24 }
 0x71e   :  { %1318 = vst.msk [vmem:[%s2202_s8 + $0x50] sm:$0xff] %vm134_vm0, %v1307_v25 }

</bundles_post_ra>
